<compile_context>
chip_gen: v7x
topology: tpu7x:2x2x1
jax: 0.10.0
libtpu: 0.0.40
codegen_flags: <defaults>
</compile_context>

<pallas_src>
import math
import functools

import jax
import jax.numpy as jnp
from jax.experimental import pallas as pl
from jax.experimental.pallas import tpu as pltpu

# ----------------------- config (small, deterministic) -----------------------
HIDDEN_DIM = 32
NUM_CLASSES = 8
NUM_QUERIES = 16
NUM_DEC_LAYERS = 3
NUM_FEATURE_LEVELS = 3
BACKBONE_STRIDES = (8, 16)
BACKBONE_CHANNELS = (16, 32)
GN_GROUPS = 32
GN_EPS = 1e-5


def _num_core_blocks():
    """2-way row split only on chips with 2 TensorCores (v7x); 1 elsewhere."""
    try:
        kind = jax.devices()[0].device_kind.lower()
    except Exception:
        return 1
    return 2 if "v7" in kind else 1


def _row_blocks(m):
    """Largest valid split of `m` rows into core blocks (blocks must stay 8-aligned)."""
    want = _num_core_blocks()
    if want > 1 and m % want == 0 and (m // want) % 8 == 0:
        return want
    return 1


# ================================ Pallas kernels ================================


def _proj_gn_kernel(x_ref, w_ref, b_ref, g_ref, beta_ref, o_ref, *,
                    batch, hwp, hw_by_level, num_groups):
    """One level tile: Conv(1x1 / im2col'd 3x3) as matmul over all samples + GroupNorm.

    x_ref: [B*HWp, Cin] bf16 (rows >= true HW of each sample are zero padding)
    w_ref: [Cin, Cout] bf16; b/g/beta: [1, Cout] f32.
    GN stats are per sample, masked to the true spatial size of the current level.
    """
    lvl = pl.program_id(0)
    y = jnp.dot(x_ref[...], w_ref[...], preferred_element_type=jnp.float32) + b_ref[...]
    rows, cout = y.shape
    cg = cout // num_groups

    # true spatial size of the current level (scalar select chain, all static ints)
    hw_i = jnp.int32(hw_by_level[0])
    for i in range(1, len(hw_by_level)):
        hw_i = jnp.where(lvl == i, jnp.int32(hw_by_level[i]), hw_i)
    hw_f = hw_i.astype(jnp.float32)

    yb = y.reshape(batch, hwp, cout)
    row = jax.lax.broadcasted_iota(jnp.int32, (batch, hwp, cout), 1)
    valid = row < hw_i

    # per-sample, per-channel masked mean and centered variance (2-pass, f32)
    m = jnp.sum(jnp.where(valid, yb, 0.0), axis=1, keepdims=True) / hw_f        # [B,1,C]
    cen = jnp.where(valid, yb - m, 0.0)
    q = jnp.sum(cen * cen, axis=1, keepdims=True) / hw_f                         # [B,1,C]

    if cg > 1:
        # group-average the per-channel stats on the VPU (no MXU selector matmul)
        gm = jnp.mean(m.reshape(batch, 1, num_groups, cg), axis=3, keepdims=True)
        gm = jnp.broadcast_to(gm, (batch, 1, num_groups, cg)).reshape(batch, 1, cout)
        gv = jnp.mean((q + (m - gm) * (m - gm)).reshape(batch, 1, num_groups, cg),
                      axis=3, keepdims=True)
        gv = jnp.broadcast_to(gv, (batch, 1, num_groups, cg)).reshape(batch, 1, cout)
    else:
        # group size 1 (GroupNorm(32, 32)): per-channel stats directly
        gm, gv = m, q

    inv = jax.lax.rsqrt(gv + GN_EPS)
    out = (yb - gm) * inv * g_ref[...] + beta_ref[...]
    # NOTE: padded spatial rows receive garbage values; the wrapper slices them away
    # using the same hw_by_level table.
    o_ref[...] = out.reshape(rows, cout).astype(o_ref.dtype)


def input_proj_gn(x_stack, w_stack, b_stack, g_stack, beta_stack,
                  hw_by_level, num_groups, batch, hwp):
    """Conv(as matmul) + GroupNorm over stacked levels, batch collapsed into rows.

    x_stack: [Lv, B*HWp, Cin] bf16, w_stack: [Lv, Cin, Cout] bf16,
    b/g/beta: [Lv, 1, Cout] f32   ->   [Lv, B*HWp, Cout] f32.   grid=(Lv,).
    """
    Lv, Rows, Cin = x_stack.shape
    Cout = w_stack.shape[-1]
    return pl.pallas_call(
        functools.partial(_proj_gn_kernel, batch=batch, hwp=hwp,
                          hw_by_level=tuple(hw_by_level), num_groups=num_groups),
        out_shape=jax.ShapeDtypeStruct((Lv, Rows, Cout), jnp.float32),
        grid=(Lv,),
        in_specs=[
            pl.BlockSpec((None, Rows, Cin), lambda l: (l, 0, 0)),
            pl.BlockSpec((None, Cin, Cout), lambda l: (l, 0, 0)),
            pl.BlockSpec((None, 1, Cout), lambda l: (l, 0, 0)),
            pl.BlockSpec((None, 1, Cout), lambda l: (l, 0, 0)),
            pl.BlockSpec((None, 1, Cout), lambda l: (l, 0, 0)),
        ],
        out_specs=pl.BlockSpec((None, Rows, Cout), lambda l: (l, 0, 0)),
        compiler_params=pltpu.CompilerParams(dimension_semantics=("parallel",)),
    )(x_stack, w_stack, b_stack, g_stack, beta_stack)


def _decoder_heads_kernel(qpos_ref, qm_ref, tgt_ref, wr_ref, br_ref,
                          wl_ref, bl_ref, wcat_ref, bcat_ref,
                          w2_ref, b2_ref, w3_ref, b3_ref,
                          logits_ref, boxes_ref, x_sc, ref_sc, *, hidden):
    """Fused reference-point head + sequential decoder-layer linears + detection heads.

    grid = (row_blocks [parallel], NUM_DEC_LAYERS [arbitrary]).
    The running activation (x_sc) and inverse-sigmoid reference (ref_sc, padded to 4
    lanes) live in VMEM scratch across the layer axis; per-layer logits/boxes are
    written directly (no hs HBM round trip, no second pallas_call).
    """
    l = pl.program_id(1)

    @pl.when(l == 0)
    def _():
        x_sc[...] = tgt_ref[...]
        # reference = sigmoid(Linear(query_pos)); weight/bias zero-padded to 4 lanes so
        # the padded coords come out at 0.5 and their inverse_sigmoid is exactly 0.
        r = jnp.dot(qpos_ref[...], wr_ref[...], preferred_element_type=jnp.float32) + br_ref[...]
        ref = jnp.clip(jax.nn.sigmoid(r), 0.0, 1.0)
        x1 = jnp.maximum(ref, 1e-5)
        x2 = jnp.maximum(1.0 - ref, 1e-5)
        ref_sc[...] = jnp.log(x1) - jnp.log(x2)          # inverse_sigmoid(reference)

    # decoder layer (stand-in linear + ReLU); query_pos + pooled memory added every layer
    xin = (x_sc[...] + qm_ref[...]).astype(jnp.bfloat16)
    x = jnp.maximum(
        jnp.dot(xin, wl_ref[...], preferred_element_type=jnp.float32) + bl_ref[...], 0.0)
    x_sc[...] = x

    # detection heads on this layer's output (weights shared across layers).
    # class head + first bbox-MLP layer share one matmul: wcat = [bbox_w1 | class_w]
    u = jnp.dot(x.astype(jnp.bfloat16), wcat_ref[...],
                preferred_element_type=jnp.float32) + bcat_ref[...]
    t = jnp.maximum(u[:, :hidden], 0.0)                  # bbox branch, lane-0 aligned
    logits_ref[...] = u[:, hidden:].astype(logits_ref.dtype)
    t = jnp.maximum(
        jnp.dot(t.astype(jnp.bfloat16), w2_ref[...], preferred_element_type=jnp.float32)
        + b2_ref[...], 0.0)
    t = jnp.dot(t.astype(jnp.bfloat16), w3_ref[...],
                preferred_element_type=jnp.float32) + b3_ref[...]
    # tmp[..., :2] += inverse_sigmoid(reference): padded ref lanes are 0, so a plain add
    boxes_ref[...] = jax.nn.sigmoid(t + ref_sc[...]).astype(boxes_ref.dtype)


def fused_decoder_heads(query_pos, qm, tgt, params):
    """query_pos/qm/tgt: [M, D]  ->  logits [L, M, C], boxes [L, M, 4]."""
    M, D = qm.shape
    L = NUM_DEC_LAYERS
    C = NUM_CLASSES
    dec_w = jnp.stack(params['dec_w']).astype(jnp.bfloat16)          # [L, D, D]
    dec_b = jnp.stack(params['dec_b'])[:, None, :]                   # [L, 1, D]
    wr4 = jnp.pad(params['w_ref'], ((0, 0), (0, 2))).astype(jnp.bfloat16)   # [D, 4]
    br4 = jnp.pad(params['b_ref'], (0, 2))[None, :]                         # [1, 4]
    wcat = jnp.concatenate([params['bbox_w1'], params['class_w']], axis=1).astype(jnp.bfloat16)
    bcat = jnp.concatenate([params['bbox_b1'], params['class_b']])[None, :]
    nblk = _row_blocks(M)
    MB = M // nblk
    logits, boxes = pl.pallas_call(
        functools.partial(_decoder_heads_kernel, hidden=D),
        out_shape=(jax.ShapeDtypeStruct((L, M, C), jnp.float32),
                   jax.ShapeDtypeStruct((L, M, 4), jnp.float32)),
        grid=(nblk, L),
        in_specs=[
            pl.BlockSpec((MB, D), lambda m, l: (m, 0)),          # query_pos (bf16)
            pl.BlockSpec((MB, D), lambda m, l: (m, 0)),          # query_pos + pooled memory
            pl.BlockSpec((MB, D), lambda m, l: (m, 0)),          # tgt
            pl.BlockSpec((D, 4), lambda m, l: (0, 0)),           # w_ref (padded to 4 lanes)
            pl.BlockSpec((1, 4), lambda m, l: (0, 0)),           # b_ref
            pl.BlockSpec((None, D, D), lambda m, l: (l, 0, 0)),  # dec_w[l]
            pl.BlockSpec((None, 1, D), lambda m, l: (l, 0, 0)),  # dec_b[l]
            pl.BlockSpec((D, D + C), lambda m, l: (0, 0)),       # [bbox_w1 | class_w]
            pl.BlockSpec((1, D + C), lambda m, l: (0, 0)),
            pl.BlockSpec((D, D), lambda m, l: (0, 0)),           # bbox_w2
            pl.BlockSpec((1, D), lambda m, l: (0, 0)),
            pl.BlockSpec((D, 4), lambda m, l: (0, 0)),           # bbox_w3
            pl.BlockSpec((1, 4), lambda m, l: (0, 0)),
        ],
        out_specs=(pl.BlockSpec((None, MB, C), lambda m, l: (l, m, 0)),
                   pl.BlockSpec((None, MB, 4), lambda m, l: (l, m, 0))),
        scratch_shapes=[pltpu.VMEM((MB, D), jnp.float32),
                        pltpu.VMEM((MB, 4), jnp.float32)],
        compiler_params=pltpu.CompilerParams(dimension_semantics=("parallel", "arbitrary")),
    )(query_pos.astype(jnp.bfloat16), qm, tgt, wr4, br4, dec_w, dec_b,
      wcat, bcat,
      params['bbox_w2'].astype(jnp.bfloat16), params['bbox_b2'][None, :],
      params['bbox_w3'].astype(jnp.bfloat16), params['bbox_b3'][None, :])
    return logits, boxes


# ============================== glue (plain JAX) ==============================


def sine_pos_embed(mask, hidden_dim):
    """Standard DETR sine positional embedding.  mask: [B,H,W] bool (True=pad). NHWC out."""
    num_pos_feats = hidden_dim // 2
    not_mask = (~mask).astype(jnp.float32)
    y_embed = jnp.cumsum(not_mask, axis=1)
    x_embed = jnp.cumsum(not_mask, axis=2)
    eps = 1e-6
    scale = 2 * math.pi
    y_embed = y_embed / (y_embed[:, -1:, :] + eps) * scale
    x_embed = x_embed / (x_embed[:, :, -1:] + eps) * scale
    dim_t = jnp.arange(num_pos_feats, dtype=jnp.float32)
    dim_t = 10000.0 ** (2.0 * jnp.floor(dim_t / 2.0) / num_pos_feats)
    pos_x = x_embed[..., None] / dim_t
    pos_y = y_embed[..., None] / dim_t
    B, H, W = mask.shape
    pos_x = jnp.stack([jnp.sin(pos_x[..., 0::2]), jnp.cos(pos_x[..., 1::2])], axis=4).reshape(B, H, W, -1)
    pos_y = jnp.stack([jnp.sin(pos_y[..., 0::2]), jnp.cos(pos_y[..., 1::2])], axis=4).reshape(B, H, W, -1)
    return jnp.concatenate([pos_y, pos_x], axis=3)          # [B, H, W, hidden]


def backbone_forward(params, samples_nchw):
    """Deterministic backbone stub (external module in the original code)."""
    B = samples_nchw.shape[0]
    x = jnp.transpose(samples_nchw, (0, 2, 3, 1))            # NCHW -> NHWC
    feats, masks, pos = [], [], []
    for lvl, stride in enumerate(BACKBONE_STRIDES):
        H = x.shape[1] // stride
        W = x.shape[2] // stride
        pooled = x.reshape(B, H, stride, W, stride, 3).mean(axis=(2, 4))     # [B,H,W,3]
        feat = jnp.tanh(pooled @ params['backbone_proj'][lvl])               # [B,H,W,C_lvl]
        m = jnp.zeros((B, H, W), dtype=bool)                                 # no padding
        feats.append(feat)
        masks.append(m)
        pos.append(sine_pos_embed(m, HIDDEN_DIM))
    return feats, masks, pos


def im2col_3x3_s2(x):
    """x: [B,H,W,C] -> patches [B,Ho,Wo,9C] for a 3x3 stride-2 pad-1 conv."""
    B, H, W, C = x.shape
    xp = jnp.pad(x, ((0, 0), (1, 1), (1, 1), (0, 0)))
    Ho = (H + 2 - 3) // 2 + 1
    Wo = (W + 2 - 3) // 2 + 1
    cols = []
    for dy in range(3):
        for dx in range(3):
            cols.append(xp[:, dy:dy + 2 * (Ho - 1) + 1:2, dx:dx + 2 * (Wo - 1) + 1:2, :])
    return jnp.concatenate(cols, axis=-1), Ho, Wo


def transformer_prepare(params, srcs, pos, query_embed):
    """Simplified stand-in for the Deformable Transformer encoder (external module).
    Flattens/pools memory and splits the queries.  Returns qpos, qm, tgt: [B*Q, D]."""
    B = srcs[0].shape[0]
    D = srcs[0].shape[-1]
    mem = []
    for lvl, (s, p) in enumerate(zip(srcs, pos)):
        flat = (s + p).reshape(B, -1, D) + params['level_embed'][lvl][None, None, :]
        mem.append(flat)
    memory = jnp.concatenate(mem, axis=1)                     # [B, S, D]
    mem_pool = memory.mean(axis=1)                            # [B, D]  (all positions valid)

    Q = query_embed.shape[0]
    query_pos, tgt = jnp.split(query_embed, 2, axis=1)        # [Q, D] each
    qpos_b = jnp.broadcast_to(query_pos[None], (B, Q, D))
    tgt_b = jnp.broadcast_to(tgt[None], (B, Q, D))
    # (query_pos + pooled memory) computed once; the fused kernel reuses it every layer.
    qm = (qpos_b + mem_pool[:, None, :]).reshape(B * Q, D)
    return qpos_b.reshape(B * Q, D), qm, tgt_b.reshape(B * Q, D)


def deformable_detr_forward(params, samples):
    """samples: [B, 3, H, W] (NCHW, padded mask assumed all-valid)."""
    features, feat_masks, pos = backbone_forward(params, samples)
    B = samples.shape[0]
    masks = list(feat_masks)

    # ---- build ALL projection-level inputs (backbone 1x1 levels + extra 3x3-s2 level) ----
    # The extra level reads features[-1] (backbone output), so there is no dependency on
    # the projection output and it can be merged into the same stacked pallas_call.
    level_inputs = []                                          # (x [B, HW, Cin], H, W)
    for f in features:
        b_, h_, w_, c_ = f.shape
        level_inputs.append((f.reshape(b_, h_ * w_, c_), h_, w_))
    extra_hw = None
    if NUM_FEATURE_LEVELS > len(features):
        # TODO(synk): handles one extra level (num_feature_levels - num_backbone_outs == 1),
        # matching this config; chains of extra levels would depend on the previous src.
        patches, Ho, Wo = im2col_3x3_s2(features[-1])
        level_inputs.append((patches.reshape(B, Ho * Wo, patches.shape[-1]), Ho, Wo))
        extra_hw = (Ho, Wo)

    hw_list = [x.shape[1] for x, _, _ in level_inputs]
    cin_list = [x.shape[2] for x, _, _ in level_inputs]
    HWp, Cinp = max(hw_list), max(cin_list)
    x_lv, w_lv, b_lv, g_lv, be_lv = [], [], [], [], []
    for l, (xf, h_, w_) in enumerate(level_inputs):
        xp = jnp.pad(xf, ((0, 0), (0, HWp - xf.shape[1]), (0, Cinp - xf.shape[2])))
        x_lv.append(xp.reshape(B * HWp, Cinp))
        p = params['input_proj'][l]
        w_lv.append(jnp.pad(p['w'], ((0, Cinp - p['w'].shape[0]), (0, 0))))
        b_lv.append(p['b'])
        g_lv.append(p['gamma'])
        be_lv.append(p['beta'])

    y = input_proj_gn(jnp.stack(x_lv).astype(jnp.bfloat16),
                      jnp.stack(w_lv).astype(jnp.bfloat16),
                      jnp.stack(b_lv)[:, None, :], jnp.stack(g_lv)[:, None, :],
                      jnp.stack(be_lv)[:, None, :], hw_list, GN_GROUPS, B, HWp)
    y = y.reshape(len(level_inputs), B, HWp, HIDDEN_DIM)

    srcs = []
    for l, (xf, h_, w_) in enumerate(level_inputs):
        srcs.append(y[l, :, :h_ * w_, :].reshape(B, h_, w_, HIDDEN_DIM))

    # extra-level mask + positional embedding
    if extra_hw is not None:
        Ho, Wo = extra_hw
        sample_mask = jnp.zeros((B,) + samples.shape[2:], dtype=bool)
        mask = jax.image.resize(sample_mask.astype(jnp.float32), (B, Ho, Wo),
                                method='nearest').astype(bool)
        masks.append(mask)
        pos.append(sine_pos_embed(mask, HIDDEN_DIM))

    # ---- transformer stub + fused decoder-layers + detection heads (one pallas_call) ----
    qpos, qm, tgt = transformer_prepare(params, srcs, pos, params['query_embed'])
    logits_flat, boxes_flat = fused_decoder_heads(qpos, qm, tgt, params)
    outputs_class = logits_flat.reshape(NUM_DEC_LAYERS, B, NUM_QUERIES, NUM_CLASSES)
    outputs_coord = boxes_flat.reshape(NUM_DEC_LAYERS, B, NUM_QUERIES, 4)

    out = {'pred_logits': outputs_class[-1], 'pred_boxes': outputs_coord[-1]}
    out['aux_outputs'] = [{'pred_logits': a, 'pred_boxes': b}
                          for a, b in zip(outputs_class[:-1], outputs_coord[:-1])]
    return out


# ============================== parameter init ==============================


def xavier_uniform(key, shape, fan_in, fan_out):
    bound = math.sqrt(6.0 / (fan_in + fan_out))
    return jax.random.uniform(key, shape, jnp.float32, -bound, bound)


def linear_default(key, fan_in, shape):
    bound = 1.0 / math.sqrt(fan_in)
    return jax.random.uniform(key, shape, jnp.float32, -bound, bound)


def init_params(key):
    keys = jax.random.split(key, 32)
    ki = iter(keys)
    params = {}
    params['backbone_proj'] = [jax.random.normal(next(ki), (3, c), jnp.float32) * 0.1
                               for c in BACKBONE_CHANNELS]
    proj = []
    for c in BACKBONE_CHANNELS:                                   # 1x1 convs
        proj.append(dict(w=xavier_uniform(next(ki), (c, HIDDEN_DIM), c, HIDDEN_DIM),
                         b=jnp.zeros((HIDDEN_DIM,), jnp.float32),
                         gamma=jnp.ones((HIDDEN_DIM,), jnp.float32),
                         beta=jnp.zeros((HIDDEN_DIM,), jnp.float32)))
    c_in = BACKBONE_CHANNELS[-1]                                  # extra: 3x3 stride-2 conv
    proj.append(dict(w=xavier_uniform(next(ki), (9 * c_in, HIDDEN_DIM), 9 * c_in, 9 * HIDDEN_DIM),
                     b=jnp.zeros((HIDDEN_DIM,), jnp.float32),
                     gamma=jnp.ones((HIDDEN_DIM,), jnp.float32),
                     beta=jnp.zeros((HIDDEN_DIM,), jnp.float32)))
    params['input_proj'] = proj

    params['class_w'] = linear_default(next(ki), HIDDEN_DIM, (HIDDEN_DIM, NUM_CLASSES))
    bias_value = -math.log((1 - 0.01) / 0.01)
    params['class_b'] = jnp.full((NUM_CLASSES,), bias_value, jnp.float32)

    params['bbox_w1'] = linear_default(next(ki), HIDDEN_DIM, (HIDDEN_DIM, HIDDEN_DIM))
    params['bbox_b1'] = linear_default(next(ki), HIDDEN_DIM, (HIDDEN_DIM,))
    params['bbox_w2'] = linear_default(next(ki), HIDDEN_DIM, (HIDDEN_DIM, HIDDEN_DIM))
    params['bbox_b2'] = linear_default(next(ki), HIDDEN_DIM, (HIDDEN_DIM,))
    params['bbox_w3'] = jnp.zeros((HIDDEN_DIM, 4), jnp.float32)              # last layer: 0
    params['bbox_b3'] = jnp.array([0.0, 0.0, -2.0, -2.0], jnp.float32)       # bias[2:] = -2

    params['query_embed'] = jax.random.normal(next(ki), (NUM_QUERIES, 2 * HIDDEN_DIM), jnp.float32)

    params['level_embed'] = jax.random.normal(next(ki), (NUM_FEATURE_LEVELS, HIDDEN_DIM), jnp.float32)
    params['w_ref'] = linear_default(next(ki), HIDDEN_DIM, (HIDDEN_DIM, 2))
    params['b_ref'] = jnp.zeros((2,), jnp.float32)
    params['dec_w'] = [linear_default(next(ki), HIDDEN_DIM, (HIDDEN_DIM, HIDDEN_DIM))
                       for _ in range(NUM_DEC_LAYERS)]
    params['dec_b'] = [jnp.zeros((HIDDEN_DIM,), jnp.float32) for _ in range(NUM_DEC_LAYERS)]
    return params


# ==================================== main ====================================

if __name__ == "__main__":
    key = jax.random.PRNGKey(0)
    k_param, k_img = jax.random.split(key)
    params = init_params(k_param)
    samples = jax.random.normal(k_img, (2, 3, 64, 64), jnp.float32)   # NCHW images

    forward = jax.jit(deformable_detr_forward)
    out = forward(params, samples)
    jax.block_until_ready(out['pred_logits'])
    jax.block_until_ready(out['pred_boxes'])

    assert out['pred_logits'].shape == (2, NUM_QUERIES, NUM_CLASSES)
    assert out['pred_boxes'].shape == (2, NUM_QUERIES, 4)
    assert len(out['aux_outputs']) == NUM_DEC_LAYERS - 1
    print("KERNEL_OK")
</pallas_src>

<mosaic_0001>
module attributes {stable_mosaic.version = 11 : i64} {
  func.func @_proj_gn_kernel(%arg0: i32, %arg1: memref<1x128x288xbf16, #tpu.memory_space<vmem>>, %arg2: memref<1x288x32xbf16, #tpu.memory_space<vmem>>, %arg3: memref<1x1x32xf32, #tpu.memory_space<vmem>>, %arg4: memref<1x1x32xf32, #tpu.memory_space<vmem>>, %arg5: memref<1x1x32xf32, #tpu.memory_space<vmem>>, %arg6: memref<1x128x32xf32, #tpu.memory_space<vmem>>) attributes {dimension_semantics = [#tpu.dimension_semantics<parallel>], iteration_bounds = array<i64: 3>, scalar_prefetch = 0 : i64, scratch_operands = 0 : i64, tpu.core_type = #tpu.core_type<tc>, window_params = [{transform_indices = @transform_0, window_bounds = array<i64: 1, 128, 288>}, {transform_indices = @transform_1, window_bounds = array<i64: 1, 288, 32>}, {transform_indices = @transform_2, window_bounds = array<i64: 1, 1, 32>}, {transform_indices = @transform_3, window_bounds = array<i64: 1, 1, 32>}, {transform_indices = @transform_4, window_bounds = array<i64: 1, 1, 32>}, {transform_indices = @transform_5, window_bounds = array<i64: 1, 128, 32>}]} {
    %c0 = arith.constant 0 : index
    %c0_0 = arith.constant 0 : index
    %c0_1 = arith.constant 0 : index
    %0 = vector.load %arg1[%c0, %c0_0, %c0_1] : memref<1x128x288xbf16, #tpu.memory_space<vmem>>, vector<1x128x288xbf16>
    %1 = vector.shape_cast %0 : vector<1x128x288xbf16> to vector<128x288xbf16>
    %c0_2 = arith.constant 0 : index
    %c0_3 = arith.constant 0 : index
    %c0_4 = arith.constant 0 : index
    %2 = vector.load %arg2[%c0_2, %c0_3, %c0_4] : memref<1x288x32xbf16, #tpu.memory_space<vmem>>, vector<1x288x32xbf16>
    %3 = vector.shape_cast %2 : vector<1x288x32xbf16> to vector<288x32xbf16>
    %cst = arith.constant dense<0.000000e+00> : vector<128x32xf32>
    %4 = tpu.matmul %1, %3, %cst {dimension_numbers = #tpu.dot_dimension_numbers<[1], [0], [0], [1], [0, 0, 1, 1], [], []>} : vector<128x288xbf16>, vector<288x32xbf16>, vector<128x32xf32> -> vector<128x32xf32>
    %c0_5 = arith.constant 0 : index
    %c0_6 = arith.constant 0 : index
    %c0_7 = arith.constant 0 : index
    %5 = vector.load %arg3[%c0_5, %c0_6, %c0_7] : memref<1x1x32xf32, #tpu.memory_space<vmem>>, vector<1x1x32xf32>
    %6 = vector.shape_cast %5 : vector<1x1x32xf32> to vector<1x32xf32>
    %7 = vector.broadcast %6 : vector<1x32xf32> to vector<128x32xf32>
    %8 = arith.addf %4, %7 : vector<128x32xf32>
    %c1_i32 = arith.constant 1 : i32
    %9 = arith.cmpi eq, %arg0, %c1_i32 : i32
    %c16_i32 = arith.constant 16 : i32
    %c64_i32 = arith.constant 64 : i32
    %10 = arith.select %9, %c16_i32, %c64_i32 : i32
    %c2_i32 = arith.constant 2 : i32
    %11 = arith.cmpi eq, %arg0, %c2_i32 : i32
    %c4_i32 = arith.constant 4 : i32
    %12 = arith.select %11, %c4_i32, %10 : i32
    %13 = arith.sitofp %12 : i32 to f32
    %14 = vector.shape_cast %8 : vector<128x32xf32> to vector<2x64x32xf32>
    %15 = tpu.iota {dimensions = array<i32: 1>} : vector<2x64x32xi32>
    %16 = vector.broadcast %12 : i32 to vector<2x64x32xi32>
    %17 = arith.cmpi slt, %15, %16 : vector<2x64x32xi32>
    %cst_8 = arith.constant 0.000000e+00 : f32
    %18 = vector.broadcast %cst_8 : f32 to vector<2x64x32xf32>
    %19 = arith.select %17, %14, %18 : vector<2x64x32xi1>, vector<2x64x32xf32>
    %cst_9 = arith.constant dense<0.000000e+00> : vector<2x32xf32>
    %20 = vector.multi_reduction <add>, %19, %cst_9 [1] : vector<2x64x32xf32> to vector<2x32xf32>
    %21 = vector.shape_cast %20 : vector<2x32xf32> to vector<2x1x32xf32>
    %22 = vector.broadcast %13 : f32 to vector<2x1x32xf32>
    %23 = arith.divf %21, %22 : vector<2x1x32xf32>
    %24 = vector.broadcast %23 : vector<2x1x32xf32> to vector<2x64x32xf32>
    %25 = arith.subf %14, %24 : vector<2x64x32xf32>
    %cst_10 = arith.constant 0.000000e+00 : f32
    %26 = vector.broadcast %cst_10 : f32 to vector<2x64x32xf32>
    %27 = arith.select %17, %25, %26 : vector<2x64x32xi1>, vector<2x64x32xf32>
    %28 = arith.mulf %27, %27 : vector<2x64x32xf32>
    %cst_11 = arith.constant dense<0.000000e+00> : vector<2x32xf32>
    %29 = vector.multi_reduction <add>, %28, %cst_11 [1] : vector<2x64x32xf32> to vector<2x32xf32>
    %30 = vector.shape_cast %29 : vector<2x32xf32> to vector<2x1x32xf32>
    %31 = vector.broadcast %13 : f32 to vector<2x1x32xf32>
    %32 = arith.divf %30, %31 : vector<2x1x32xf32>
    %cst_12 = arith.constant 9.99999974E-6 : f32
    %33 = vector.broadcast %cst_12 : f32 to vector<2x1x32xf32>
    %34 = arith.addf %32, %33 : vector<2x1x32xf32>
    %35 = math.rsqrt %34 : vector<2x1x32xf32>
    %36 = vector.broadcast %23 : vector<2x1x32xf32> to vector<2x64x32xf32>
    %37 = arith.subf %14, %36 : vector<2x64x32xf32>
    %38 = vector.broadcast %35 : vector<2x1x32xf32> to vector<2x64x32xf32>
    %39 = arith.mulf %37, %38 : vector<2x64x32xf32>
    %c0_13 = arith.constant 0 : index
    %c0_14 = arith.constant 0 : index
    %c0_15 = arith.constant 0 : index
    %40 = vector.load %arg4[%c0_13, %c0_14, %c0_15] : memref<1x1x32xf32, #tpu.memory_space<vmem>>, vector<1x1x32xf32>
    %41 = vector.shape_cast %40 : vector<1x1x32xf32> to vector<1x32xf32>
    %42 = vector.shape_cast %41 : vector<1x32xf32> to vector<1x1x32xf32>
    %43 = vector.broadcast %42 : vector<1x1x32xf32> to vector<2x64x32xf32>
    %44 = arith.mulf %39, %43 : vector<2x64x32xf32>
    %c0_16 = arith.constant 0 : index
    %c0_17 = arith.constant 0 : index
    %c0_18 = arith.constant 0 : index
    %45 = vector.load %arg5[%c0_16, %c0_17, %c0_18] : memref<1x1x32xf32, #tpu.memory_space<vmem>>, vector<1x1x32xf32>
    %46 = vector.shape_cast %45 : vector<1x1x32xf32> to vector<1x32xf32>
    %47 = vector.shape_cast %46 : vector<1x32xf32> to vector<1x1x32xf32>
    %48 = vector.broadcast %47 : vector<1x1x32xf32> to vector<2x64x32xf32>
    %49 = arith.addf %44, %48 : vector<2x64x32xf32>
    %50 = vector.shape_cast %49 : vector<2x64x32xf32> to vector<128x32xf32>
    %c0_19 = arith.constant 0 : index
    %c0_20 = arith.constant 0 : index
    %c0_21 = arith.constant 0 : index
    %51 = vector.load %arg6[%c0_19, %c0_20, %c0_21] : memref<1x128x32xf32, #tpu.memory_space<vmem>>, vector<1x128x32xf32>
    %52 = vector.shape_cast %51 : vector<1x128x32xf32> to vector<128x32xf32>
    %53 = vector.shape_cast %50 : vector<128x32xf32> to vector<1x128x32xf32>
    tpu.vector_store %arg6[%c0_19, %c0_20, %c0_21], %53 {strides = array<i32>} : memref<1x128x32xf32, #tpu.memory_space<vmem>>, vector<1x128x32xf32>,
    return
  }
  func.func @transform_0(%arg0: i32) -> (i32, i32, i32) {
    %c0_i32 = arith.constant 0 : i32
    %c0_i32_0 = arith.constant 0 : i32
    %c0_i32_1 = arith.constant 0 : i32
    return %arg0, %c0_i32, %c0_i32_0 : i32, i32, i32
  }
  func.func @transform_1(%arg0: i32) -> (i32, i32, i32) {
    %c0_i32 = arith.constant 0 : i32
    %c0_i32_0 = arith.constant 0 : i32
    %c0_i32_1 = arith.constant 0 : i32
    return %arg0, %c0_i32, %c0_i32_0 : i32, i32, i32
  }
  func.func @transform_2(%arg0: i32) -> (i32, i32, i32) {
    %c0_i32 = arith.constant 0 : i32
    %c0_i32_0 = arith.constant 0 : i32
    %c0_i32_1 = arith.constant 0 : i32
    return %arg0, %c0_i32, %c0_i32_0 : i32, i32, i32
  }
  func.func @transform_3(%arg0: i32) -> (i32, i32, i32) {
    %c0_i32 = arith.constant 0 : i32
    %c0_i32_0 = arith.constant 0 : i32
    %c0_i32_1 = arith.constant 0 : i32
    return %arg0, %c0_i32, %c0_i32_0 : i32, i32, i32
  }
  func.func @transform_4(%arg0: i32) -> (i32, i32, i32) {
    %c0_i32 = arith.constant 0 : i32
    %c0_i32_0 = arith.constant 0 : i32
    %c0_i32_1 = arith.constant 0 : i32
    return %arg0, %c0_i32, %c0_i32_0 : i32, i32, i32
  }
  func.func @transform_5(%arg0: i32) -> (i32, i32, i32) {
    %c0_i32 = arith.constant 0 : i32
    %c0_i32_0 = arith.constant 0 : i32
    %c0_i32_1 = arith.constant 0 : i32
    return %arg0, %c0_i32, %c0_i32_0 : i32, i32, i32
  }
}

module attributes {stable_mosaic.version = 11 : i64} {
  func.func @_decoder_heads_kernel(%arg0: i32, %arg1: i32, %arg2: memref<32x32xbf16, #tpu.memory_space<vmem>>, %arg3: memref<32x32xf32, #tpu.memory_space<vmem>>, %arg4: memref<32x32xf32, #tpu.memory_space<vmem>>, %arg5: memref<32x4xbf16, #tpu.memory_space<vmem>>, %arg6: memref<1x4xf32, #tpu.memory_space<vmem>>, %arg7: memref<1x32x32xbf16, #tpu.memory_space<vmem>>, %arg8: memref<1x1x32xf32, #tpu.memory_space<vmem>>, %arg9: memref<32x40xbf16, #tpu.memory_space<vmem>>, %arg10: memref<1x40xf32, #tpu.memory_space<vmem>>, %arg11: memref<32x32xbf16, #tpu.memory_space<vmem>>, %arg12: memref<1x32xf32, #tpu.memory_space<vmem>>, %arg13: memref<32x4xbf16, #tpu.memory_space<vmem>>, %arg14: memref<1x4xf32, #tpu.memory_space<vmem>>, %arg15: memref<1x32x8xf32, #tpu.memory_space<vmem>>, %arg16: memref<1x32x4xf32, #tpu.memory_space<vmem>>, %arg17: memref<32x32xf32, #tpu.memory_space<vmem>>, %arg18: memref<32x4xf32, #tpu.memory_space<vmem>>) attributes {dimension_semantics = [#tpu.dimension_semantics<parallel>, #tpu.dimension_semantics<arbitrary>], iteration_bounds = array<i64: 1, 3>, scalar_prefetch = 0 : i64, scratch_operands = 2 : i64, tpu.core_type = #tpu.core_type<tc>, window_params = [{transform_indices = @transform_0, window_bounds = array<i64: 32, 32>}, {transform_indices = @transform_1, window_bounds = array<i64: 32, 32>}, {transform_indices = @transform_2, window_bounds = array<i64: 32, 32>}, {pipeline_mode = #tpu.pipeline_mode<synchronous>, transform_indices = @transform_3, window_bounds = array<i64: 32, 4>}, {pipeline_mode = #tpu.pipeline_mode<synchronous>, transform_indices = @transform_4, window_bounds = array<i64: 1, 4>}, {transform_indices = @transform_5, window_bounds = array<i64: 1, 32, 32>}, {transform_indices = @transform_6, window_bounds = array<i64: 1, 1, 32>}, {pipeline_mode = #tpu.pipeline_mode<synchronous>, transform_indices = @transform_7, window_bounds = array<i64: 32, 40>}, {pipeline_mode = #tpu.pipeline_mode<synchronous>, transform_indices = @transform_8, window_bounds = array<i64: 1, 40>}, {pipeline_mode = #tpu.pipeline_mode<synchronous>, transform_indices = @transform_9, window_bounds = array<i64: 32, 32>}, {pipeline_mode = #tpu.pipeline_mode<synchronous>, transform_indices = @transform_10, window_bounds = array<i64: 1, 32>}, {pipeline_mode = #tpu.pipeline_mode<synchronous>, transform_indices = @transform_11, window_bounds = array<i64: 32, 4>}, {pipeline_mode = #tpu.pipeline_mode<synchronous>, transform_indices = @transform_12, window_bounds = array<i64: 1, 4>}, {transform_indices = @transform_13, window_bounds = array<i64: 1, 32, 8>}, {transform_indices = @transform_14, window_bounds = array<i64: 1, 32, 4>}]} {
    %c0_i32 = arith.constant 0 : i32
    %0 = arith.cmpi eq, %arg1, %c0_i32 : i32
    %1 = arith.extui %0 : i1 to i32
    %c0_i32_0 = arith.constant 0 : i32
    %2 = arith.cmpi ne, %1, %c0_i32_0 : i32
    scf.if %2 {
      %c0_39 = arith.constant 0 : index
      %c0_40 = arith.constant 0 : index
      %54 = vector.load %arg4[%c0_39, %c0_40] : memref<32x32xf32, #tpu.memory_space<vmem>>, vector<32x32xf32>
      %c0_41 = arith.constant 0 : index
      %c0_42 = arith.constant 0 : index
      %55 = vector.load %arg17[%c0_41, %c0_42] : memref<32x32xf32, #tpu.memory_space<vmem>>, vector<32x32xf32>
      tpu.vector_store %arg17[%c0_41, %c0_42], %54 {strides = array<i32>} : memref<32x32xf32, #tpu.memory_space<vmem>>, vector<32x32xf32>,
      %c0_43 = arith.constant 0 : index
      %c0_44 = arith.constant 0 : index
      %56 = vector.load %arg2[%c0_43, %c0_44] : memref<32x32xbf16, #tpu.memory_space<vmem>>, vector<32x32xbf16>
      %c0_45 = arith.constant 0 : index
      %c0_46 = arith.constant 0 : index
      %57 = vector.load %arg5[%c0_45, %c0_46] : memref<32x4xbf16, #tpu.memory_space<vmem>>, vector<32x4xbf16>
      %cst_47 = arith.constant dense<0.000000e+00> : vector<32x4xf32>
      %58 = tpu.matmul %56, %57, %cst_47 {dimension_numbers = #tpu.dot_dimension_numbers<[1], [0], [0], [1], [0, 0, 1, 1], [], []>} : vector<32x32xbf16>, vector<32x4xbf16>, vector<32x4xf32> -> vector<32x4xf32>
      %c0_48 = arith.constant 0 : index
      %c0_49 = arith.constant 0 : index
      %59 = vector.load %arg6[%c0_48, %c0_49] : memref<1x4xf32, #tpu.memory_space<vmem>>, vector<1x4xf32>
      %60 = vector.broadcast %59 : vector<1x4xf32> to vector<32x4xf32>
      %61 = arith.addf %58, %60 : vector<32x4xf32>
      %62 = arith.negf %61 : vector<32x4xf32>
      %63 = math.exp %62 : vector<32x4xf32>
      %cst_50 = arith.constant 1.000000e+00 : f32
      %64 = vector.broadcast %cst_50 : f32 to vector<32x4xf32>
      %65 = arith.addf %64, %63 : vector<32x4xf32>
      %66 = arith.divf %64, %65 : vector<32x4xf32>
      %cst_51 = arith.constant 0.000000e+00 : f32
      %cst_52 = arith.constant 1.000000e+00 : f32
      %67 = vector.broadcast %cst_51 : f32 to vector<32x4xf32>
      %68 = arith.maximumf %67, %66 : vector<32x4xf32>
      %69 = vector.broadcast %cst_52 : f32 to vector<32x4xf32>
      %70 = arith.minimumf %69, %68 : vector<32x4xf32>
      %cst_53 = arith.constant 9.99999974E-6 : f32
      %71 = vector.broadcast %cst_53 : f32 to vector<32x4xf32>
      %72 = arith.maximumf %70, %71 : vector<32x4xf32>
      %cst_54 = arith.constant 1.000000e+00 : f32
      %73 = vector.broadcast %cst_54 : f32 to vector<32x4xf32>
      %74 = arith.subf %73, %70 : vector<32x4xf32>
      %cst_55 = arith.constant 9.99999974E-6 : f32
      %75 = vector.broadcast %cst_55 : f32 to vector<32x4xf32>
      %76 = arith.maximumf %74, %75 : vector<32x4xf32>
      %77 = math.log %72 : vector<32x4xf32>
      %78 = math.log %76 : vector<32x4xf32>
      %79 = arith.subf %77, %78 : vector<32x4xf32>
      %c0_56 = arith.constant 0 : index
      %c0_57 = arith.constant 0 : index
      %80 = vector.load %arg18[%c0_56, %c0_57] : memref<32x4xf32, #tpu.memory_space<vmem>>, vector<32x4xf32>
      tpu.vector_store %arg18[%c0_56, %c0_57], %79 {strides = array<i32>} : memref<32x4xf32, #tpu.memory_space<vmem>>, vector<32x4xf32>,
    } else {
    }
    %c0 = arith.constant 0 : index
    %c0_1 = arith.constant 0 : index
    %3 = vector.load %arg17[%c0, %c0_1] : memref<32x32xf32, #tpu.memory_space<vmem>>, vector<32x32xf32>
    %c0_2 = arith.constant 0 : index
    %c0_3 = arith.constant 0 : index
    %4 = vector.load %arg3[%c0_2, %c0_3] : memref<32x32xf32, #tpu.memory_space<vmem>>, vector<32x32xf32>
    %5 = arith.addf %3, %4 : vector<32x32xf32>
    %6 = arith.truncf %5 : vector<32x32xf32> to vector<32x32xbf16>
    %c0_4 = arith.constant 0 : index
    %c0_5 = arith.constant 0 : index
    %c0_6 = arith.constant 0 : index
    %7 = vector.load %arg7[%c0_4, %c0_5, %c0_6] : memref<1x32x32xbf16, #tpu.memory_space<vmem>>, vector<1x32x32xbf16>
    %8 = vector.shape_cast %7 : vector<1x32x32xbf16> to vector<32x32xbf16>
    %cst = arith.constant dense<0.000000e+00> : vector<32x32xf32>
    %9 = tpu.matmul %6, %8, %cst {dimension_numbers = #tpu.dot_dimension_numbers<[1], [0], [0], [1], [0, 0, 1, 1], [], []>} : vector<32x32xbf16>, vector<32x32xbf16>, vector<32x32xf32> -> vector<32x32xf32>
    %c0_7 = arith.constant 0 : index
    %c0_8 = arith.constant 0 : index
    %c0_9 = arith.constant 0 : index
    %10 = vector.load %arg8[%c0_7, %c0_8, %c0_9] : memref<1x1x32xf32, #tpu.memory_space<vmem>>, vector<1x1x32xf32>
    %11 = vector.shape_cast %10 : vector<1x1x32xf32> to vector<1x32xf32>
    %12 = vector.broadcast %11 : vector<1x32xf32> to vector<32x32xf32>
    %13 = arith.addf %9, %12 : vector<32x32xf32>
    %cst_10 = arith.constant 0.000000e+00 : f32
    %14 = vector.broadcast %cst_10 : f32 to vector<32x32xf32>
    %15 = arith.maximumf %13, %14 : vector<32x32xf32>
    %c0_11 = arith.constant 0 : index
    %c0_12 = arith.constant 0 : index
    %16 = vector.load %arg17[%c0_11, %c0_12] : memref<32x32xf32, #tpu.memory_space<vmem>>, vector<32x32xf32>
    tpu.vector_store %arg17[%c0_11, %c0_12], %15 {strides = array<i32>} : memref<32x32xf32, #tpu.memory_space<vmem>>, vector<32x32xf32>,
    %17 = arith.truncf %15 : vector<32x32xf32> to vector<32x32xbf16>
    %c0_13 = arith.constant 0 : index
    %c0_14 = arith.constant 0 : index
    %18 = vector.load %arg9[%c0_13, %c0_14] : memref<32x40xbf16, #tpu.memory_space<vmem>>, vector<32x40xbf16>
    %cst_15 = arith.constant dense<0.000000e+00> : vector<32x40xf32>
    %19 = tpu.matmul %17, %18, %cst_15 {dimension_numbers = #tpu.dot_dimension_numbers<[1], [0], [0], [1], [0, 0, 1, 1], [], []>} : vector<32x32xbf16>, vector<32x40xbf16>, vector<32x40xf32> -> vector<32x40xf32>
    %c0_16 = arith.constant 0 : index
    %c0_17 = arith.constant 0 : index
    %20 = vector.load %arg10[%c0_16, %c0_17] : memref<1x40xf32, #tpu.memory_space<vmem>>, vector<1x40xf32>
    %21 = vector.broadcast %20 : vector<1x40xf32> to vector<32x40xf32>
    %22 = arith.addf %19, %21 : vector<32x40xf32>
    %23 = vector.extract_strided_slice %22 {offsets = [0, 0], sizes = [32, 32], strides = [1, 1]} : vector<32x40xf32> to vector<32x32xf32>
    %cst_18 = arith.constant 0.000000e+00 : f32
    %24 = vector.broadcast %cst_18 : f32 to vector<32x32xf32>
    %25 = arith.maximumf %23, %24 : vector<32x32xf32>
    %26 = vector.extract_strided_slice %22 {offsets = [0, 32], sizes = [32, 8], strides = [1, 1]} : vector<32x40xf32> to vector<32x8xf32>
    %c0_19 = arith.constant 0 : index
    %c0_20 = arith.constant 0 : index
    %c0_21 = arith.constant 0 : index
    %27 = vector.load %arg15[%c0_19, %c0_20, %c0_21] : memref<1x32x8xf32, #tpu.memory_space<vmem>>, vector<1x32x8xf32>
    %28 = vector.shape_cast %27 : vector<1x32x8xf32> to vector<32x8xf32>
    %29 = vector.shape_cast %26 : vector<32x8xf32> to vector<1x32x8xf32>
    tpu.vector_store %arg15[%c0_19, %c0_20, %c0_21], %29 {strides = array<i32>} : memref<1x32x8xf32, #tpu.memory_space<vmem>>, vector<1x32x8xf32>,
    %30 = arith.truncf %25 : vector<32x32xf32> to vector<32x32xbf16>
    %c0_22 = arith.constant 0 : index
    %c0_23 = arith.constant 0 : index
    %31 = vector.load %arg11[%c0_22, %c0_23] : memref<32x32xbf16, #tpu.memory_space<vmem>>, vector<32x32xbf16>
    %cst_24 = arith.constant dense<0.000000e+00> : vector<32x32xf32>
    %32 = tpu.matmul %30, %31, %cst_24 {dimension_numbers = #tpu.dot_dimension_numbers<[1], [0], [0], [1], [0, 0, 1, 1], [], []>} : vector<32x32xbf16>, vector<32x32xbf16>, vector<32x32xf32> -> vector<32x32xf32>
    %c0_25 = arith.constant 0 : index
    %c0_26 = arith.constant 0 : index
    %33 = vector.load %arg12[%c0_25, %c0_26] : memref<1x32xf32, #tpu.memory_space<vmem>>, vector<1x32xf32>
    %34 = vector.broadcast %33 : vector<1x32xf32> to vector<32x32xf32>
    %35 = arith.addf %32, %34 : vector<32x32xf32>
    %cst_27 = arith.constant 0.000000e+00 : f32
    %36 = vector.broadcast %cst_27 : f32 to vector<32x32xf32>
    %37 = arith.maximumf %35, %36 : vector<32x32xf32>
    %38 = arith.truncf %37 : vector<32x32xf32> to vector<32x32xbf16>
    %c0_28 = arith.constant 0 : index
    %c0_29 = arith.constant 0 : index
    %39 = vector.load %arg13[%c0_28, %c0_29] : memref<32x4xbf16, #tpu.memory_space<vmem>>, vector<32x4xbf16>
    %cst_30 = arith.constant dense<0.000000e+00> : vector<32x4xf32>
    %40 = tpu.matmul %38, %39, %cst_30 {dimension_numbers = #tpu.dot_dimension_numbers<[1], [0], [0], [1], [0, 0, 1, 1], [], []>} : vector<32x32xbf16>, vector<32x4xbf16>, vector<32x4xf32> -> vector<32x4xf32>
    %c0_31 = arith.constant 0 : index
    %c0_32 = arith.constant 0 : index
    %41 = vector.load %arg14[%c0_31, %c0_32] : memref<1x4xf32, #tpu.memory_space<vmem>>, vector<1x4xf32>
    %42 = vector.broadcast %41 : vector<1x4xf32> to vector<32x4xf32>
    %43 = arith.addf %40, %42 : vector<32x4xf32>
    %c0_33 = arith.constant 0 : index
    %c0_34 = arith.constant 0 : index
    %44 = vector.load %arg18[%c0_33, %c0_34] : memref<32x4xf32, #tpu.memory_space<vmem>>, vector<32x4xf32>
    %45 = arith.addf %43, %44 : vector<32x4xf32>
    %46 = arith.negf %45 : vector<32x4xf32>
    %47 = math.exp %46 : vector<32x4xf32>
    %cst_35 = arith.constant 1.000000e+00 : f32
    %48 = vector.broadcast %cst_35 : f32 to vector<32x4xf32>
    %49 = arith.addf %48, %47 : vector<32x4xf32>
    %50 = arith.divf %48, %49 : vector<32x4xf32>
    %c0_36 = arith.constant 0 : index
    %c0_37 = arith.constant 0 : index
    %c0_38 = arith.constant 0 : index
    %51 = vector.load %arg16[%c0_36, %c0_37, %c0_38] : memref<1x32x4xf32, #tpu.memory_space<vmem>>, vector<1x32x4xf32>
    %52 = vector.shape_cast %51 : vector<1x32x4xf32> to vector<32x4xf32>
    %53 = vector.shape_cast %50 : vector<32x4xf32> to vector<1x32x4xf32>
    tpu.vector_store %arg16[%c0_36, %c0_37, %c0_38], %53 {strides = array<i32>} : memref<1x32x4xf32, #tpu.memory_space<vmem>>, vector<1x32x4xf32>,
    return
  }
  func.func @transform_0(%arg0: i32, %arg1: i32) -> (i32, i32) {
    %c0_i32 = arith.constant 0 : i32
    %c0_i32_0 = arith.constant 0 : i32
    return %arg0, %c0_i32 : i32, i32
  }
  func.func @transform_1(%arg0: i32, %arg1: i32) -> (i32, i32) {
    %c0_i32 = arith.constant 0 : i32
    %c0_i32_0 = arith.constant 0 : i32
    return %arg0, %c0_i32 : i32, i32
  }
  func.func @transform_2(%arg0: i32, %arg1: i32) -> (i32, i32) {
    %c0_i32 = arith.constant 0 : i32
    %c0_i32_0 = arith.constant 0 : i32
    return %arg0, %c0_i32 : i32, i32
  }
  func.func @transform_3(%arg0: i32, %arg1: i32) -> (i32, i32) {
    %c0_i32 = arith.constant 0 : i32
    %c0_i32_0 = arith.constant 0 : i32
    %c0_i32_1 = arith.constant 0 : i32
    return %c0_i32, %c0_i32_0 : i32, i32
  }
  func.func @transform_4(%arg0: i32, %arg1: i32) -> (i32, i32) {
    %c0_i32 = arith.constant 0 : i32
    %c0_i32_0 = arith.constant 0 : i32
    %c0_i32_1 = arith.constant 0 : i32
    return %c0_i32, %c0_i32_0 : i32, i32
  }
  func.func @transform_5(%arg0: i32, %arg1: i32) -> (i32, i32, i32) {
    %c0_i32 = arith.constant 0 : i32
    %c0_i32_0 = arith.constant 0 : i32
    %c0_i32_1 = arith.constant 0 : i32
    return %arg1, %c0_i32, %c0_i32_0 : i32, i32, i32
  }
  func.func @transform_6(%arg0: i32, %arg1: i32) -> (i32, i32, i32) {
    %c0_i32 = arith.constant 0 : i32
    %c0_i32_0 = arith.constant 0 : i32
    %c0_i32_1 = arith.constant 0 : i32
    return %arg1, %c0_i32, %c0_i32_0 : i32, i32, i32
  }
  func.func @transform_7(%arg0: i32, %arg1: i32) -> (i32, i32) {
    %c0_i32 = arith.constant 0 : i32
    %c0_i32_0 = arith.constant 0 : i32
    %c0_i32_1 = arith.constant 0 : i32
    return %c0_i32, %c0_i32_0 : i32, i32
  }
  func.func @transform_8(%arg0: i32, %arg1: i32) -> (i32, i32) {
    %c0_i32 = arith.constant 0 : i32
    %c0_i32_0 = arith.constant 0 : i32
    %c0_i32_1 = arith.constant 0 : i32
    return %c0_i32, %c0_i32_0 : i32, i32
  }
  func.func @transform_9(%arg0: i32, %arg1: i32) -> (i32, i32) {
    %c0_i32 = arith.constant 0 : i32
    %c0_i32_0 = arith.constant 0 : i32
    %c0_i32_1 = arith.constant 0 : i32
    return %c0_i32, %c0_i32_0 : i32, i32
  }
  func.func @transform_10(%arg0: i32, %arg1: i32) -> (i32, i32) {
    %c0_i32 = arith.constant 0 : i32
    %c0_i32_0 = arith.constant 0 : i32
    %c0_i32_1 = arith.constant 0 : i32
    return %c0_i32, %c0_i32_0 : i32, i32
  }
  func.func @transform_11(%arg0: i32, %arg1: i32) -> (i32, i32) {
    %c0_i32 = arith.constant 0 : i32
    %c0_i32_0 = arith.constant 0 : i32
    %c0_i32_1 = arith.constant 0 : i32
    return %c0_i32, %c0_i32_0 : i32, i32
  }
  func.func @transform_12(%arg0: i32, %arg1: i32) -> (i32, i32) {
    %c0_i32 = arith.constant 0 : i32
    %c0_i32_0 = arith.constant 0 : i32
    %c0_i32_1 = arith.constant 0 : i32
    return %c0_i32, %c0_i32_0 : i32, i32
  }
  func.func @transform_13(%arg0: i32, %arg1: i32) -> (i32, i32, i32) {
    %c0_i32 = arith.constant 0 : i32
    %c0_i32_0 = arith.constant 0 : i32
    return %arg1, %arg0, %c0_i32 : i32, i32, i32
  }
  func.func @transform_14(%arg0: i32, %arg1: i32) -> (i32, i32, i32) {
    %c0_i32 = arith.constant 0 : i32
    %c0_i32_0 = arith.constant 0 : i32
    return %arg1, %arg0, %c0_i32 : i32, i32, i32
  }
}

</mosaic_0001>

<bundles_post_ra>
// kernel: deformable_detr_forward.2
= control target key start
LH: loop header
LB: loop body
LE: loop exit
PB: predicated region body
PF: predicated region fallthrough
CT: control target
= control target key end

     0   :  { %s1442_s18 = smov 0   ;;  %s1946_s0 = inlined_call_operand.vmem [shape: bf16[3,128,288], index: 0, kind: input, shape index: {}]   ;;  %s1947_s1 = inlined_call_operand.vmem [shape: bf16[3,288,32], index: 1, kind: input, shape index: {}]   ;;  %s1948_s2 = inlined_call_operand.vmem [shape: f32[3,1,32], index: 2, kind: input, shape index: {}]   ;;  %s1949_s3 = inlined_call_operand.vmem [shape: f32[3,1,32], index: 3, kind: input, shape index: {}]   ;;  %s1950_s4 = inlined_call_operand.vmem [shape: f32[3,1,32], index: 4, kind: input, shape index: {}]   ;;  %s1951_s5 = inlined_call_operand.vmem [shape: f32[3,128,32], index: 5, kind: output, shape index: {}]  }
   0x1 LB: > { %s1448_s19 = sadd.s32 4294967295, %s1410_s18   ;;  %p1167_p0 = scmp.ge.s32.totalorder %s1410_s18, 1  ;;  %s1410_s18 = sphi %s1442_s18, %s15_s18  }
   0x2   : > { %p221_p1 = scmp.lt.s32.totalorder %s1410_s18, 4 }
   0x4   : > { %p222_p2 = pnand %p1167_p0, %p221_p1 }
   0x5   : > { %p263_p3 = scmp.lt.s32.totalorder (!%p222_p2), %s1448_s19, 2  ;;  %vm591_vm0 = vcmask (!%p222_p2), 261120   ;;  %p810_p4 = scmp.eq.s32.totalorder (!%p222_p2), %s1448_s19, 1  ;;  %v815_v54 = vlaneseq (!%p222_p2) }
   0x6   : > { %225 = sbr.rel (%p222_p2) target bundleno = 409 (0x199), region = 40  ;;  %p812_p5 = scmp.eq.s32.totalorder (!%p222_p2), %s1448_s19, 2 }
   0xd   : > { %s1454_s20 = scalar_select %p263_p3, %s1448_s19, 2 }
   0xe   : > { %s811_s29 = scalar_select %p810_p4, 16, 64 }
   0xf   : > { %s1339_s21 = smul.u32 144, %s1454_s20  ;;  %s275_s7 = scalar_lea.vmem %s1948_s2, %s1454_s20 }
  0x10   : > { %s1338_s25 = smul.u32 192, %s1454_s20  ;;  %s1953_s29 = smov (%p812_p5, %s811_s29), 4 }
  0x11   : > { %s1460_s24 = scalar_lea.vmem %s1947_s1, %s1339_s21  ;;  %s814_s8 = scvt.s32.f32 %s1953_s29 }
  0x12   : > { %v1348_v0 = vld [vmem:[%s1460_s24 + $0x40] sm:$0xff]   ;;  %v1350_v2 = vld [vmem:[%s1460_s24 + $0x48] sm:$0xff]   ;;  %v1352_v4 = vld [vmem:[%s1460_s24 + $0x50] sm:$0xff]   ;;  %s1475_s28 = scalar_lea.vmem %s1946_s0, %s1338_s25  ;;  %s278_s11 = scalar_lea.vmem %s1949_s3, %s1454_s20 }
  0x13   : > { %v1349_v1 = vld [vmem:[%s1460_s24] sm:$0xff]   ;;  %1228 = vmatprep.subr.bf16.mxu0 %v1348_v0  ;;  %1322 = vmatprep.subr.bf16.mxu1 %v1348_v0  ;;  %v1351_v3 = vld [vmem:[%s1460_s24 + $0x8] sm:$0xff]   ;;  %v1353_v5 = vld [vmem:[%s1460_s24 + $0x10] sm:$0xff]   ;;  %s281_s14 = scalar_lea.vmem %s1950_s4, %s1454_s20  ;;  %s1227_s15 = sshll.u32 %s1454_s20, 7 }
  0x14   : > { %1229 = vmatpush3.bf16.msra.mxu0 %v1349_v1  ;;  %1330 = vmatpush3.bf16.msra.mxu1 %v1349_v1  ;;  %v1354_v6 = vld [vmem:[%s1460_s24 + $0x58] sm:$0xff]   ;;  %v1356_v8 = vld [vmem:[%s1460_s24 + $0x60] sm:$0xff]   ;;  %v1358_v10 = vld [vmem:[%s1460_s24 + $0x68] sm:$0xff]   ;;  %v1532_v1 = vshrl.u32 %v815_v54, 7  ;;  %s1870_s19 = scalar_lea.vmem %s1951_s5, %s1227_s15 }
  0x15   : > { %1230 = vmatprep.subr.bf16.mxu0 %v1350_v2  ;;  %1323 = vmatprep.subr.bf16.mxu1 %v1350_v2  ;;  %v1355_v7 = vld [vmem:[%s1460_s24 + $0x18] sm:$0xff]   ;;  %v1357_v9 = vld [vmem:[%s1460_s24 + $0x20] sm:$0xff]   ;;  %v1359_v13 = vld [vmem:[%s1460_s24 + $0x28] sm:$0xff]  }
  0x16   : > { %v1366_v11 = vld [vmem:[%s1475_s28 + $0x4] ss:$12 sps:$4 sm:$0xff]   ;;  %v1369_v12 = vld [vmem:[%s1475_s28 + $0x94] ss:$12 sps:$4 sm:$0xff]   ;;  %v1362_v16 = vld [vmem:[%s1460_s24 + $0x78] sm:$0xff]  }
  0x17   : > { %v1360_v14 = vld [vmem:[%s1460_s24 + $0x70] sm:$0xff]   ;;  %648 = vmatprep.mubr.bf16.mxu0 %v1366_v11  ;;  %696 = vmatprep.mubr.bf16.mxu1 %v1369_v12  ;;  %v1363_v17 = vld [vmem:[%s1460_s24 + $0x38] sm:$0xff]   ;;  %v1364_v18 = vld [vmem:[%s1475_s28] ss:$12 sps:$4 sm:$0xff]  }
  0x18   : > { %1231 = vmatpush3.bf16.msra.mxu0 %v1351_v3  ;;  %1331 = vmatpush3.bf16.msra.mxu1 %v1351_v3  ;;  %v1361_v15 = vld [vmem:[%s1460_s24 + $0x30] sm:$0xff]   ;;  %v1374_v19 = vld [vmem:[%s1460_s24 + $0x80] sm:$0xff]   ;;  %v1370_v21 = vld [vmem:[%s1475_s28 + $0x1c] ss:$12 sps:$4 sm:$0xff]  }
  0x19   : > { %1232 = vmatprep.subr.bf16.mxu0 %v1352_v4  ;;  %1324 = vmatprep.subr.bf16.mxu1 %v1352_v4  ;;  %v1367_v20 = vld [vmem:[%s1475_s28 + $0x90] ss:$12 sps:$4 sm:$0xff]   ;;  %v1372_v22 = vld [vmem:[%s1475_s28 + $0xac] ss:$12 sps:$4 sm:$0xff]   ;;  %v1376_v25 = vld [vmem:[%s1475_s28 + $0xa8] ss:$12 sps:$4 sm:$0xff]  }
  0x1a   : > { %v1377_v23 = vld [vmem:[%s1460_s24 + $0x88] sm:$0xff]   ;;  %v1375_v24 = vld [vmem:[%s1475_s28 + $0x18] ss:$12 sps:$4 sm:$0xff]   ;;  %v1378_v26 = vld [vmem:[%s1475_s28 + $0x34] ss:$12 sps:$4 sm:$0xff]  }
  0x1b   : > { %v1380_v27 = vld [vmem:[%s1475_s28 + $0x8] ss:$12 sps:$4 sm:$0xff]   ;;  %v1381_v28 = vld [vmem:[%s1475_s28 + $0x30] ss:$12 sps:$4 sm:$0xff]   ;;  %v1382_v29 = vld [vmem:[%s1475_s28 + $0x20] ss:$12 sps:$4 sm:$0xff]  }
  0x1c   : > { %1233 = vmatpush3.bf16.msra.mxu0 %v1353_v5  ;;  %1332 = vmatpush3.bf16.msra.mxu1 %v1353_v5  ;;  %v1383_v30 = vld [vmem:[%s1475_s28 + $0x4c] ss:$12 sps:$4 sm:$0xff]   ;;  %v1386_v32 = vld [vmem:[%s1475_s28 + $0x48] ss:$12 sps:$4 sm:$0xff]   ;;  %v1387_v33 = vld [vmem:[%s1475_s28 + $0x50] ss:$12 sps:$4 sm:$0xff]   ;;  %v1539_v5 = vstv %s1953_s29 }
  0x1d   : > { %1234 = vmatprep.subr.bf16.mxu0 %v1354_v6  ;;  %1325 = vmatprep.subr.bf16.mxu1 %v1354_v6  ;;  %v1385_v31 = vld [vmem:[%s1475_s28 + $0x38] ss:$12 sps:$4 sm:$0xff]   ;;  %v1390_v35 = vld [vmem:[%s1475_s28 + $0x68] ss:$12 sps:$4 sm:$0xff]   ;;  %v1391_v36 = vld [vmem:[%s1475_s28 + $0x60] ss:$12 sps:$4 sm:$0xff]   ;;  %vm825_vm1 = vcmp.lt.s32.totalorder %v1532_v1, %v1539_v5 }
  0x1e   : > { %v1388_v34 = vld [vmem:[%s1475_s28 + $0x64] ss:$12 sps:$4 sm:$0xff]   ;;  %v1392_v37 = vld [vmem:[%s1475_s28 + $0x80] ss:$12 sps:$4 sm:$0xff]   ;;  %v1393_v38 = vld [vmem:[%s1475_s28 + $0x7c] ss:$12 sps:$4 sm:$0xff]  }
  0x1f   : > { %v1395_v39 = vld [vmem:[%s1475_s28 + $0x98] ss:$12 sps:$4 sm:$0xff]   ;;  %v1397_v41 = vld [vmem:[%s1475_s28 + $0xb0] ss:$12 sps:$4 sm:$0xff]   ;;  %v1536_v4 = vld [vmem:[%s275_s7] ss:$0 sm:$0xff] }
  0x20   : > { %1235 = vmatpush3.bf16.msra.mxu0 %v1355_v7  ;;  %1333 = vmatpush3.bf16.msra.mxu1 %v1355_v7  ;;  %v1396_v40 = vld [vmem:[%s1475_s28 + $0x78] ss:$12 sps:$4 sm:$0xff]   ;;  %v1543_v7 = vadd.s32 16, %v1532_v1 }
  0x21   : > { %1236 = vmatprep.subr.bf16.mxu0 %v1356_v8  ;;  %1326 = vmatprep.subr.bf16.mxu1 %v1356_v8  ;;  %v1546_v8 = vadd.s32 8, %v1532_v1 }
  0x22   : > { %vm827_vm2 = vcmp.lt.s32.totalorder %v1543_v7, %v1539_v5 }
  0x23   : > { %vm826_vm3 = vcmp.lt.s32.totalorder %v1546_v8, %v1539_v5 }
  0x24   : > { %1237 = vmatpush3.bf16.msra.mxu0 %v1357_v9  ;;  %1334 = vmatpush3.bf16.msra.mxu1 %v1357_v9 }
  0x25   : > { %1238 = vmatprep.subr.bf16.mxu0 %v1358_v10  ;;  %1327 = vmatprep.subr.bf16.mxu1 %v1358_v10 }
  0x28   : > { %1239 = vmatpush3.bf16.msra.mxu0 %v1359_v13  ;;  %1335 = vmatpush3.bf16.msra.mxu1 %v1359_v13 }
  0x29   : > { %1240 = vmatprep.subr.bf16.mxu0 %v1360_v14  ;;  %1328 = vmatprep.subr.bf16.mxu1 %v1360_v14 }
  0x2c   : > { %1241 = vmatpush3.bf16.msra.mxu0 %v1361_v15  ;;  %1336 = vmatpush3.bf16.msra.mxu1 %v1361_v15 }
  0x2d   : > { %1242 = vmatprep.subr.bf16.mxu0 %v1362_v16  ;;  %1329 = vmatprep.subr.bf16.mxu1 %v1362_v16  ;;  %v1555_v16 = vadd.s32 24, %v1532_v1 }
  0x2f   : > { %vm828_vm4 = vcmp.lt.s32.totalorder %v1555_v16, %v1539_v5 }
  0x30   : > { %1243 = vmatpush3.bf16.msra.mxu0 %v1363_v17  ;;  %1337 = vmatpush3.bf16.msra.mxu1 %v1363_v17 }
  0x31   : > { %1302 = vmatprep.subr.bf16.mxu1 %v1374_v19 }
  0x33   : > { %649 = vmatmul.mubr.bf16.vlgmr.msra.gmra.mrb[0].mxu0 %v1364_v18  ;;  %697 = vmatmul.mubr.bf16.vlgmr.msra.gmra.mrb[0].mxu1 %v1367_v20 }
  0x34   : > { %656 = vmatprep.mubr.bf16.mxu0 %v1370_v21  ;;  %704 = vmatprep.mubr.bf16.mxu1 %v1372_v22 }
  0x35   : > { %1303 = vmatpush3.bf16.msra.mxu1 %v1374_v19 }
  0x36   : > { %1304 = vmatprep.subr.bf16.mxu1 %v1377_v23 }
  0x39   : > { %1305 = vmatpush3.bf16.msra.mxu1 %v1377_v23 }
  0x3b   : > { %657 = vmatmul.mubr.bf16.gmra.mrb[4].mxu0 %v1375_v24  ;;  %705 = vmatmul.mubr.bf16.gmra.mrb[4].mxu1 %v1376_v25 }
  0x3c   : > { %664 = vmatprep.mubr.bf16.mxu0 %v1378_v26  ;;  %1306 = vmatprep.mubr.msk.bf16.mxu1 %vm591_vm0, %v1380_v27 }
  0x43   : > { %665 = vmatmul.mubr.bf16.gmra.mrb[8].mxu0 %v1381_v28  ;;  %1307 = vmatmul.mubr.msk.bf16.vlgmr.msra.gmra.mrb[8].mxu1 %vm591_vm0, %v1382_v29  ;;  %v1575_v28 = vadd.s32 32, %v1532_v1 }
  0x44   : > { %672 = vmatprep.mubr.bf16.mxu0 %v1383_v30  ;;  %1310 = vmatprep.mubr.msk.bf16.mxu1 %vm591_vm0, %v1385_v31 }
  0x45   : > { %vm829_vm5 = vcmp.lt.s32.totalorder %v1575_v28, %v1539_v5 }
  0x4b   : > { %673 = vmatmul.mubr.bf16.gmra.mrb[12].mxu0 %v1386_v32  ;;  %1311 = vmatmul.mubr.msk.bf16.gmra.mrb[12].mxu1 %vm591_vm0, %v1387_v33  ;;  %v1588_v33 = vadd.s32 40, %v1532_v1 }
  0x4c   : > { %680 = vmatprep.mubr.bf16.mxu0 %v1388_v34  ;;  %1314 = vmatprep.mubr.msk.bf16.mxu1 %vm591_vm0, %v1390_v35 }
  0x4d   : > { %vm830_vm6 = vcmp.lt.s32.totalorder %v1588_v33, %v1539_v5 }
  0x53   : > { %681 = vmatmul.mubr.bf16.gmra.mrb[16].mxu0 %v1391_v36  ;;  %1315 = vmatmul.mubr.msk.bf16.gmra.mrb[16].mxu1 %vm591_vm0, %v1392_v37 }
  0x54   : > { %688 = vmatprep.mubr.bf16.mxu0 %v1393_v38  ;;  %1318 = vmatprep.mubr.msk.bf16.mxu1 %vm591_vm0, %v1395_v39 }
  0x5b   : > { %689 = vmatmul.mubr.bf16.gmra.mrb[20].mxu0 %v1396_v40  ;;  %1319 = vmatmul.mubr.msk.bf16.gmra.mrb[20].mxu1 %vm591_vm0, %v1397_v41  ;;  %v1597_v41 = vadd.s32 48, %v1532_v1 }
  0x5d   : > { %vm831_vm7 = vcmp.lt.s32.totalorder %v1597_v41, %v1539_v5 }
 0x106   : > { %v1244_v42 = vpop.f32.mrb[0].mxu0  ;;  %v1280_v43 = vpop.f32.mrb[0].mxu1 }
 0x107   : > { %v1245_v44 = vpop.f32.mrb[1].mxu0  ;;  %v1281_v45 = vpop.f32.mrb[1].mxu1 }
 0x108   : > { %v1246_v46 = vadd.f32 %v1245_v44, %v1244_v42  ;;  %v1247_v47 = vpop.f32.mrb[2].mxu0  ;;  %v1519_v48 = vadd.f32 %v1281_v45, %v1280_v43  ;;  %v1283_v49 = vpop.f32.mrb[2].mxu1 }
 0x109   : > { %v1248_v50 = vpop.f32.mrb[3].mxu0  ;;  %v1284_v51 = vpop.f32.mrb[3].mxu1 }
 0x10a   : > { %v1249_v52 = vadd.f32 %v1248_v50, %v1247_v47  ;;  %v1521_v53 = vadd.f32 %v1284_v51, %v1283_v49  ;;  %v651_v11 = vadd.f32 %v1246_v46, %v1536_v4  ;;  %v1605_v51 = vadd.s32 56, %v1532_v1 }
 0x10c   : > { %v654_v21 = vadd.f32 %v1249_v52, %v1536_v4  ;;  %vm832_vm8 = vcmp.lt.s32.totalorder %v1605_v51, %v1539_v5 }
 0x10e   : > { %v1250_v55 = vpop.f32.mrb[4].mxu0  ;;  %v1286_v56 = vpop.f32.mrb[4].mxu1 }
 0x10f   : > { %v1251_v57 = vpop.f32.mrb[5].mxu0  ;;  %v1287_v58 = vpop.f32.mrb[5].mxu1 }
 0x110   : > { %v1252_v59 = vadd.f32 %v1251_v57, %v1250_v55  ;;  %v1253_v60 = vpop.f32.mrb[6].mxu0  ;;  %v1528_v61 = vadd.f32 %v1287_v58, %v1286_v56  ;;  %v1289_v62 = vpop.f32.mrb[6].mxu1 }
 0x111   : > { %v1254_v63 = vpop.f32.mrb[7].mxu0  ;;  %v1290_v0 = vpop.f32.mrb[7].mxu1 }
 0x112   : > { %v1255_v2 = vadd.f32 %v1254_v63, %v1253_v60  ;;  %v1534_v3 = vadd.f32 %v1290_v0, %v1289_v62  ;;  %v659_v6 = vadd.f32 %v1252_v59, %v1536_v4 }
 0x114   : > { %v662_v15 = vadd.f32 %v1255_v2, %v1536_v4 }
 0x116   : > { %v1256_v9 = vpop.f32.mrb[8].mxu0  ;;  %v1308_v10 = vpop.f32.mrb[8].mxu1 }
 0x117   : > { %v1549_v12 = vadd.f32 %v1308_v10, %v659_v6  ;;  %v1257_v13 = vpop.f32.mrb[9].mxu0  ;;  %v747_v14 = vpop.f32.mrb[9].mxu1 }
 0x118   : > { %v1258_v17 = vadd.f32 %v1257_v13, %v1256_v9  ;;  %v1557_v18 = vadd.f32 %v747_v14, %v651_v11  ;;  %v1259_v19 = vpop.f32.mrb[10].mxu0  ;;  %v1309_v20 = vpop.f32.mrb[10].mxu1 }
 0x119   : > { %v1562_v22 = vadd.f32 %v1309_v20, %v662_v15  ;;  %v1260_v23 = vpop.f32.mrb[11].mxu0  ;;  %v750_v24 = vpop.f32.mrb[11].mxu1  ;;  %v835_v29 = vsel %vm827_vm2, %v1549_v12, 0.0 }
 0x11a   : > { %v833_v25 = vsel %vm825_vm1, %v1557_v18, 0.0  ;;  %v1261_v26 = vadd.f32 %v1260_v23, %v1259_v19  ;;  %v1570_v27 = vadd.f32 %v750_v24, %v654_v21  ;;  %v667_v38 = vadd.f32 %v1258_v17, %v1536_v4 }
 0x11b   : > { %v849_v31 = vsel %vm591_vm0, %v833_v25, 0.0  ;;  %v836_v34 = vsel %vm828_vm4, %v1562_v22, 0.0  ;;  %v852_v39 = vsel %vm591_vm0, %v835_v29, 0.0  ;;  %v891_v25 = vstv %s814_s8 }
 0x11c   : > { %v834_v30 = vsel %vm826_vm3, %v1570_v27, 0.0  ;;  %v854_v49 = vsel %vm591_vm0, %v836_v34, 0.0  ;;  %v670_v52 = vadd.f32 %v1261_v26, %v1536_v4  ;;  %1398 = vrcp.f32 %v891_v25 }
 0x11d   : > { %v850_v32 = vsel %vm591_vm0, %v834_v30, 0.0 }
 0x11e   : > { %v851_v35 = vadd.f32 %v850_v32, %v849_v31  ;;  %v1262_v36 = vpop.f32.mrb[12].mxu0  ;;  %v1312_v37 = vpop.f32.mrb[12].mxu1 }
 0x11f   : > { %v1263_v40 = vpop.f32.mrb[13].mxu0  ;;  %v763_v42 = vpop.f32.mrb[13].mxu1 }
 0x120   : > { %v853_v43 = vadd.f32 %v852_v39, %v851_v35  ;;  %v1264_v44 = vadd.f32 %v1263_v40, %v1262_v36  ;;  %v1601_v45 = vadd.f32 %v763_v42, %v667_v38  ;;  %v1265_v46 = vpop.f32.mrb[14].mxu0  ;;  %v1313_v47 = vpop.f32.mrb[14].mxu1  ;;  %v707_v39 = vadd.f32 %v1528_v61, %v1536_v4 }
 0x121   : > { %v1266_v50 = vpop.f32.mrb[15].mxu0  ;;  %v766_v54 = vpop.f32.mrb[15].mxu1  ;;  %v710_v61 = vadd.f32 %v1534_v3, %v1536_v4 }
 0x122   : > { %v675_v55 = vadd.f32 %v1264_v44, %v1536_v4  ;;  %v837_v56 = vsel %vm829_vm5, %v1601_v45, 0.0  ;;  %v855_v57 = vadd.f32 %v854_v49, %v853_v43  ;;  %v1267_v58 = vadd.f32 %v1266_v50, %v1265_v46 }
 0x123   : > { %v856_v59 = vsel %vm591_vm0, %v837_v56, 0.0  ;;  %v1618_v60 = vadd.f32 %v766_v54, %v670_v52  ;;  %v699_v46 = vadd.f32 %v1519_v48, %v1536_v4 }
 0x124   : > { %v1620_v62 = vadd.f32 %v1312_v37, %v675_v55  ;;  %v857_v63 = vadd.f32 %v856_v59, %v855_v57  ;;  %v678_v0 = vadd.f32 %v1267_v58, %v1536_v4 }
 0x125   : > { %v838_v2 = vsel %vm830_vm6, %v1618_v60, 0.0 }
 0x126   : > { %v839_v6 = vsel %vm831_vm7, %v1620_v62, 0.0  ;;  %v1634_v9 = vadd.f32 %v1313_v47, %v678_v0  ;;  %v858_v10 = vsel %vm591_vm0, %v838_v2, 0.0  ;;  %v1268_v11 = vpop.f32.mrb[16].mxu0  ;;  %v1316_v13 = vpop.f32.mrb[16].mxu1 }
 0x127   : > { %v859_v14 = vadd.f32 %v858_v10, %v857_v63  ;;  %v860_v15 = vsel %vm591_vm0, %v839_v6, 0.0  ;;  %v1269_v17 = vpop.f32.mrb[17].mxu0  ;;  %v779_v19 = vpop.f32.mrb[17].mxu1 }
 0x128   : > { %v840_v20 = vsel %vm832_vm8, %v1634_v9, 0.0  ;;  %v1270_v21 = vadd.f32 %v1269_v17, %v1268_v11  ;;  %v1271_v23 = vpop.f32.mrb[18].mxu0  ;;  %v1317_v24 = vpop.f32.mrb[18].mxu1  ;;  %v702_v11 = vadd.f32 %v1521_v53, %v1536_v4 }
 0x129   : > { %v862_v26 = vsel %vm591_vm0, %v840_v20, 0.0  ;;  %v861_v29 = vadd.f32 %v860_v15, %v859_v14  ;;  %v1272_v30 = vpop.f32.mrb[19].mxu0  ;;  %v782_v31 = vpop.f32.mrb[19].mxu1 }
 0x12a   : > { %v1273_v32 = vadd.f32 %v1272_v30, %v1271_v23  ;;  %v683_v34 = vadd.f32 %v1270_v21, %v1536_v4  ;;  %v1679_v23 = vpop.eup %1398 }
 0x12b   : > { %v863_v35 = vadd.f32 %v862_v26, %v861_v29 }
 0x12c   : > { %v1644_v36 = vadd.f32 %v779_v19, %v683_v34  ;;  %v686_v37 = vadd.f32 %v1273_v32, %v1536_v4 }
 0x12d   : > { %v864_v38 = vrot.slane %v863_v35, 4 }
 0x12e   : > { %v841_v40 = vsel %vm825_vm1, %v1644_v36, 0.0  ;;  %v1653_v42 = vadd.f32 %v782_v31, %v686_v37  ;;  %v1274_v43 = vpop.f32.mrb[20].mxu0  ;;  %v1320_v44 = vpop.f32.mrb[20].mxu1 }
 0x12f   : > { %v865_v47 = vadd.f32 %v864_v38, %v863_v35  ;;  %v1657_v49 = vadd.f32 %v1320_v44, %v707_v39  ;;  %v1275_v50 = vpop.f32.mrb[21].mxu0  ;;  %v795_v52 = vpop.f32.mrb[21].mxu1  ;;  %v870_v48 = vsel %vm591_vm0, %v841_v40, 0.0 }
 0x130   : > { %v842_v54 = vsel %vm826_vm3, %v1653_v42, 0.0  ;;  %v1276_v55 = vadd.f32 %v1275_v50, %v1274_v43  ;;  %v1665_v56 = vadd.f32 %v795_v52, %v699_v46  ;;  %v1277_v57 = vpop.f32.mrb[22].mxu0  ;;  %v1321_v58 = vpop.f32.mrb[22].mxu1 }
 0x131   : > { %v866_v59 = vrot.slane %v865_v47, 2  ;;  %v871_v63 = vsel %vm591_vm0, %v842_v54, 0.0  ;;  %v1669_v0 = vadd.f32 %v1321_v58, %v710_v61  ;;  %v1278_v2 = vpop.f32.mrb[23].mxu0  ;;  %v798_v6 = vpop.f32.mrb[23].mxu1 }
 0x132   : > { %v872_v3 = vadd.f32 %v871_v63, %v870_v48  ;;  %v691_v10 = vadd.f32 %v1276_v55, %v1536_v4  ;;  %v1279_v15 = vadd.f32 %v1278_v2, %v1277_v57  ;;  %v1676_v19 = vadd.f32 %v798_v6, %v702_v11 }
 0x133   : > { %v867_v14 = vadd.f32 %v866_v59, %v865_v47  ;;  %v845_v47 = vsel %vm829_vm5, %v1665_v56, 0.0  ;;  %v847_v6 = vsel %vm831_vm7, %v1657_v49, 0.0 }
 0x134   : > { %v1674_v17 = vadd.f32 %v1316_v13, %v691_v10  ;;  %v694_v21 = vadd.f32 %v1279_v15, %v1536_v4  ;;  %v846_v55 = vsel %vm830_vm6, %v1676_v19, 0.0  ;;  %v877_v48 = vsel %vm591_vm0, %v845_v47, 0.0 }
 0x135   : > { %v868_v20 = vrot.slane %v867_v14, 1 }
 0x136   : > { %v843_v25 = vsel %vm827_vm2, %v1674_v17, 0.0  ;;  %v1686_v53 = vadd.f32 %v1317_v24, %v694_v21  ;;  %v848_v21 = vsel %vm832_vm8, %v1669_v0, 0.0 }
 0x137   : > { %v869_v26 = vadd.f32 %v868_v20, %v867_v14  ;;  %v873_v29 = vsel %vm591_vm0, %v843_v25, 0.0  ;;  %v879_v14 = vsel %vm591_vm0, %v846_v55, 0.0 }
 0x138   : > { %v874_v30 = vadd.f32 %v873_v29, %v872_v3  ;;  %v881_v29 = vsel %vm591_vm0, %v847_v6, 0.0 }
 0x139   : > { %v893_v13 = vmul.f32 %v1679_v23, %v869_v26 }
 0x13b   : > { %v1690_v31 = vsub.f32 %v1557_v18, %v893_v13  ;;  %v1693_v4 = vsub.f32 %v1570_v27, %v893_v13  ;;  %v1696_v32 = vsub.f32 %v1549_v12, %v893_v13  ;;  %v1699_v34 = vsub.f32 %v1562_v22, %v893_v13 }
 0x13c   : > { %v1702_v35 = vsub.f32 %v1601_v45, %v893_v13  ;;  %v1705_v24 = vsub.f32 %v1618_v60, %v893_v13  ;;  %v1708_v37 = vsub.f32 %v1620_v62, %v893_v13  ;;  %v1711_v18 = vsub.f32 %v1634_v9, %v893_v13 }
 0x13d   : > { %v911_v12 = vsel %vm825_vm1, %v1690_v31, 0.0  ;;  %v912_v22 = vsel %vm826_vm3, %v1693_v4, 0.0  ;;  %v913_v27 = vsel %vm827_vm2, %v1696_v32, 0.0  ;;  %v844_v45 = vsel %vm828_vm4, %v1686_v53, 0.0 }
 0x13e   : > { %v914_v60 = vsel %vm828_vm4, %v1699_v34, 0.0  ;;  %v927_v62 = vmul.f32 %v911_v12, %v911_v12  ;;  %v928_v9 = vmul.f32 %v912_v22, %v912_v22  ;;  %v929_v38 = vmul.f32 %v913_v27, %v913_v27 }
 0x13f   : > { %v915_v39 = vsel %vm829_vm5, %v1702_v35, 0.0  ;;  %v875_v40 = vsel %vm591_vm0, %v844_v45, 0.0  ;;  %v930_v43 = vmul.f32 %v914_v60, %v914_v60  ;;  %v916_v50 = vsel %vm830_vm6, %v1705_v24, 0.0 }
 0x140   : > { %v943_v44 = vsel %vm591_vm0, %v927_v62, 0.0  ;;  %v944_v46 = vsel %vm591_vm0, %v928_v9, 0.0  ;;  %v931_v61 = vmul.f32 %v915_v39, %v915_v39  ;;  %v946_v54 = vsel %vm591_vm0, %v929_v38, 0.0 }
 0x141   : > { %v945_v52 = vadd.f32 %v944_v46, %v943_v44  ;;  %v876_v57 = vadd.f32 %v875_v40, %v874_v30  ;;  %v917_v58 = vsel %vm831_vm7, %v1708_v37, 0.0  ;;  %v932_v63 = vmul.f32 %v916_v50, %v916_v50 }
 0x142   : > { %v948_v2 = vsel %vm591_vm0, %v930_v43, 0.0  ;;  %v918_v10 = vsel %vm832_vm8, %v1711_v18, 0.0  ;;  %v933_v15 = vmul.f32 %v917_v58, %v917_v58  ;;  %v950_v20 = vsel %vm591_vm0, %v931_v61, 0.0 }
 0x143   : > { %v947_v59 = vadd.f32 %v946_v54, %v945_v52  ;;  %v878_v3 = vadd.f32 %v877_v48, %v876_v57  ;;  %v934_v30 = vmul.f32 %v918_v10, %v918_v10  ;;  %v952_v13 = vsel %vm591_vm0, %v932_v63, 0.0 }
 0x144   : > { %v883_v27 = vsel %vm591_vm0, %v848_v21, 0.0  ;;  %v954_v45 = vsel %vm591_vm0, %v933_v15, 0.0 }
 0x145   : > { %v949_v11 = vadd.f32 %v948_v2, %v947_v59  ;;  %v880_v25 = vadd.f32 %v879_v14, %v878_v3  ;;  %v956_v9 = vsel %vm591_vm0, %v934_v30, 0.0 }
 0x147   : > { %v951_v26 = vadd.f32 %v950_v20, %v949_v11  ;;  %v882_v12 = vadd.f32 %v881_v29, %v880_v25 }
 0x149   : > { %v953_v22 = vadd.f32 %v952_v13, %v951_v26  ;;  %v884_v60 = vadd.f32 %v883_v27, %v882_v12  ;;  %v1849_v12 = vld [vmem:[%s278_s11] ss:$0 sm:$0xff] }
 0x14b   : > { %v955_v62 = vadd.f32 %v954_v45, %v953_v22  ;;  %v885_v38 = vrot.slane %v884_v60, 4 }
 0x14d   : > { %v957_v39 = vadd.f32 %v956_v9, %v955_v62  ;;  %v886_v40 = vadd.f32 %v885_v38, %v884_v60 }
 0x14f   : > { %v958_v43 = vrot.slane %v957_v39, 4  ;;  %v887_v44 = vrot.slane %v886_v40, 2 }
 0x151   : > { %v959_v46 = vadd.f32 %v958_v43, %v957_v39  ;;  %v888_v47 = vadd.f32 %v887_v44, %v886_v40 }
 0x153   : > { %v960_v50 = vrot.slane %v959_v46, 2  ;;  %v889_v52 = vrot.slane %v888_v47, 1 }
 0x155   : > { %v961_v61 = vadd.f32 %v960_v50, %v959_v46  ;;  %v890_v54 = vadd.f32 %v889_v52, %v888_v47  ;;  %v1861_v46 = vld [vmem:[%s281_s14] ss:$0 sm:$0xff] }
 0x157   : > { %v962_v55 = vrot.slane %v961_v61, 1  ;;  %v894_v57 = vmul.f32 %v1679_v23, %v890_v54 }
 0x159   : > { %v963_v58 = vadd.f32 %v962_v55, %v961_v61  ;;  %v1780_v59 = vsub.f32 %v1644_v36, %v894_v57  ;;  %v1783_v48 = vsub.f32 %v1653_v42, %v894_v57  ;;  %v1786_v63 = vsub.f32 %v1674_v17, %v894_v57 }
 0x15a   : > { %v1789_v2 = vsub.f32 %v1686_v53, %v894_v57  ;;  %v1793_v3 = vsub.f32 %v1665_v56, %v894_v57  ;;  %v1796_v10 = vsub.f32 %v1676_v19, %v894_v57  ;;  %v1799_v36 = vsub.f32 %v1657_v49, %v894_v57 }
 0x15b   : > { %v985_v6 = vmul.f32 %v1679_v23, %v963_v58  ;;  %v1802_v42 = vsub.f32 %v1669_v0, %v894_v57  ;;  %v919_v17 = vsel %vm825_vm1, %v1780_v59, 0.0  ;;  %v920_v56 = vsel %vm826_vm3, %v1783_v48, 0.0 }
 0x15c   : > { %v921_v19 = vsel %vm827_vm2, %v1786_v63, 0.0  ;;  %v922_v0 = vsel %vm828_vm4, %v1789_v2, 0.0  ;;  %v923_v1 = vsel %vm829_vm5, %v1793_v3, 0.0  ;;  %v924_v8 = vsel %vm830_vm6, %v1796_v10, 0.0 }
 0x15d   : > { %v987_v49 = vadd.f32 1e-05, %v985_v6  ;;  %v925_v7 = vsel %vm831_vm7, %v1799_v36, 0.0  ;;  %v926_v16 = vsel %vm832_vm8, %v1802_v42, 0.0  ;;  %v935_v53 = vmul.f32 %v919_v17, %v919_v17 }
 0x15e   : > { %v936_v28 = vmul.f32 %v920_v56, %v920_v56  ;;  %v937_v11 = vmul.f32 %v921_v19, %v921_v19  ;;  %v938_v33 = vmul.f32 %v922_v0, %v922_v0  ;;  %v939_v41 = vmul.f32 %v923_v1, %v923_v1 }
 0x15f   : > { %1400 = vrsqrt.f32 %v987_v49  ;;  %v964_v14 = vsel %vm591_vm0, %v935_v53, 0.0  ;;  %v940_v26 = vmul.f32 %v924_v8, %v924_v8  ;;  %v941_v22 = vmul.f32 %v925_v7, %v925_v7 }
 0x160   : > { %v965_v15 = vsel %vm591_vm0, %v936_v28, 0.0  ;;  %v967_v21 = vsel %vm591_vm0, %v937_v11, 0.0  ;;  %v969_v5 = vsel %vm591_vm0, %v938_v33, 0.0  ;;  %v971_v29 = vsel %vm591_vm0, %v939_v41, 0.0 }
 0x161   : > { %v966_v20 = vadd.f32 %v965_v15, %v964_v14  ;;  %v942_v27 = vmul.f32 %v926_v16, %v926_v16  ;;  %v973_v45 = vsel %vm591_vm0, %v940_v26, 0.0  ;;  %v975_v17 = vsel %vm591_vm0, %v941_v22, 0.0 }
 0x163   : > { %v968_v25 = vadd.f32 %v967_v21, %v966_v20  ;;  %v977_v19 = vsel %vm591_vm0, %v942_v27, 0.0 }
 0x165   : > { %v970_v51 = vadd.f32 %v969_v5, %v968_v25 }
 0x167   : > { %v972_v30 = vadd.f32 %v971_v29, %v970_v51 }
 0x169   : > { %v1401_v13 = vpop.eup %1400  ;;  %v974_v6 = vadd.f32 %v973_v45, %v972_v30 }
 0x16a   : > { %v991_v60 = vmul.f32 %v1401_v13, %v1690_v31  ;;  %v992_v62 = vmul.f32 %v1401_v13, %v1693_v4  ;;  %v993_v9 = vmul.f32 %v1401_v13, %v1696_v32  ;;  %v994_v38 = vmul.f32 %v1401_v13, %v1699_v34 }
 0x16b   : > { %v995_v39 = vmul.f32 %v1401_v13, %v1702_v35  ;;  %v996_v40 = vmul.f32 %v1401_v13, %v1705_v24  ;;  %v997_v43 = vmul.f32 %v1401_v13, %v1708_v37  ;;  %v998_v44 = vmul.f32 %v1401_v13, %v1711_v18 }
 0x16c   : > { %v1014_v47 = vmul.f32 %v1849_v12, %v991_v60  ;;  %v1015_v31 = vmul.f32 %v1849_v12, %v992_v62  ;;  %v1016_v4 = vmul.f32 %v1849_v12, %v993_v9  ;;  %v1017_v32 = vmul.f32 %v1849_v12, %v994_v38 }
 0x16d   : > { %v1018_v34 = vmul.f32 %v1849_v12, %v995_v39  ;;  %v1019_v35 = vmul.f32 %v1849_v12, %v996_v40  ;;  %v1020_v24 = vmul.f32 %v1849_v12, %v997_v43  ;;  %v1021_v37 = vmul.f32 %v1849_v12, %v998_v44 }
 0x16e   : > { %v1037_v18 = vadd.f32 %v1861_v46, %v1014_v47  ;;  %v1038_v50 = vadd.f32 %v1861_v46, %v1015_v31  ;;  %v1039_v52 = vadd.f32 %v1861_v46, %v1016_v4  ;;  %v1040_v61 = vadd.f32 %v1861_v46, %v1017_v32 }
 0x16f   : > { %v1041_v54 = vadd.f32 %v1861_v46, %v1018_v34  ;;  %v1042_v55 = vadd.f32 %v1861_v46, %v1019_v35  ;;  %v1043_v57 = vadd.f32 %v1861_v46, %v1020_v24  ;;  %v1044_v58 = vadd.f32 %v1861_v46, %v1021_v37 }
 0x170   : > { %1053 = vst.msk [vmem:[%s1870_s19] sm:$0xff] %vm591_vm0, %v1037_v18  ;;  %1054 = vst.msk [vmem:[%s1870_s19 + $0x8] sm:$0xff] %vm591_vm0, %v1038_v50  ;;  %v976_v56 = vadd.f32 %v975_v17, %v974_v6 }
 0x171   : > { %1055 = vst.msk [vmem:[%s1870_s19 + $0x10] sm:$0xff] %vm591_vm0, %v1039_v52  ;;  %1056 = vst.msk [vmem:[%s1870_s19 + $0x18] sm:$0xff] %vm591_vm0, %v1040_v61 }
 0x172   : > { %1057 = vst.msk [vmem:[%s1870_s19 + $0x20] sm:$0xff] %vm591_vm0, %v1041_v54  ;;  %1058 = vst.msk [vmem:[%s1870_s19 + $0x28] sm:$0xff] %vm591_vm0, %v1042_v55  ;;  %v978_v49 = vadd.f32 %v977_v19, %v976_v56 }
 0x173   : > { %1059 = vst.msk [vmem:[%s1870_s19 + $0x30] sm:$0xff] %vm591_vm0, %v1043_v57  ;;  %1060 = vst.msk [vmem:[%s1870_s19 + $0x38] sm:$0xff] %vm591_vm0, %v1044_v58 }
 0x174   : > { %v979_v0 = vrot.slane %v978_v49, 4 }
 0x176   : > { %v980_v1 = vadd.f32 %v979_v0, %v978_v49 }
 0x178   : > { %v981_v8 = vrot.slane %v980_v1, 2 }
 0x17a   : > { %v982_v7 = vadd.f32 %v981_v8, %v980_v1 }
 0x17c   : > { %v983_v16 = vrot.slane %v982_v7, 1 }
 0x17e   : > { %v984_v53 = vadd.f32 %v983_v16, %v982_v7 }
 0x180   : > { %v986_v28 = vmul.f32 %v1679_v23, %v984_v53 }
 0x182   : > { %v988_v11 = vadd.f32 1e-05, %v986_v28 }
 0x184   : > { %1402 = vrsqrt.f32 %v988_v11 }
 0x18e   : > { %v1403_v14 = vpop.eup %1402 }
 0x18f   : > { %v999_v33 = vmul.f32 %v1403_v14, %v1780_v59  ;;  %v1000_v15 = vmul.f32 %v1403_v14, %v1783_v48  ;;  %v1001_v20 = vmul.f32 %v1403_v14, %v1786_v63  ;;  %v1002_v41 = vmul.f32 %v1403_v14, %v1789_v2 }
 0x190   : > { %v1003_v21 = vmul.f32 %v1403_v14, %v1793_v3  ;;  %v1004_v25 = vmul.f32 %v1403_v14, %v1796_v10  ;;  %v1005_v26 = vmul.f32 %v1403_v14, %v1799_v36  ;;  %v1006_v5 = vmul.f32 %v1403_v14, %v1802_v42 }
 0x191   : > { %v1022_v23 = vmul.f32 %v1849_v12, %v999_v33  ;;  %v1023_v51 = vmul.f32 %v1849_v12, %v1000_v15  ;;  %v1024_v59 = vmul.f32 %v1849_v12, %v1001_v20  ;;  %v1025_v48 = vmul.f32 %v1849_v12, %v1002_v41 }
 0x192   : > { %v1026_v63 = vmul.f32 %v1849_v12, %v1003_v21  ;;  %v1027_v2 = vmul.f32 %v1849_v12, %v1004_v25  ;;  %v1028_v3 = vmul.f32 %v1849_v12, %v1005_v26  ;;  %v1029_v10 = vmul.f32 %v1849_v12, %v1006_v5 }
 0x193   : > { %v1045_v36 = vadd.f32 %v1861_v46, %v1022_v23  ;;  %v1046_v42 = vadd.f32 %v1861_v46, %v1023_v51  ;;  %v1047_v29 = vadd.f32 %v1861_v46, %v1024_v59  ;;  %v1048_v30 = vadd.f32 %v1861_v46, %v1025_v48 }
 0x194   : > { %v1049_v13 = vadd.f32 %v1861_v46, %v1026_v63  ;;  %v1050_v22 = vadd.f32 %v1861_v46, %v1027_v2  ;;  %v1051_v27 = vadd.f32 %v1861_v46, %v1028_v3  ;;  %v1052_v45 = vadd.f32 %v1861_v46, %v1029_v10 }
 0x195   : > { %1061 = vst.msk [vmem:[%s1870_s19 + $0x40] sm:$0xff] %vm591_vm0, %v1045_v36  ;;  %1062 = vst.msk [vmem:[%s1870_s19 + $0x48] sm:$0xff] %vm591_vm0, %v1046_v42 }
 0x196   : > { %1063 = vst.msk [vmem:[%s1870_s19 + $0x50] sm:$0xff] %vm591_vm0, %v1047_v29  ;;  %1064 = vst.msk [vmem:[%s1870_s19 + $0x58] sm:$0xff] %vm591_vm0, %v1048_v30 }
 0x197   : > { %1065 = vst.msk [vmem:[%s1870_s19 + $0x60] sm:$0xff] %vm591_vm0, %v1049_v13  ;;  %1066 = vst.msk [vmem:[%s1870_s19 + $0x68] sm:$0xff] %vm591_vm0, %v1050_v22 }
 0x198   : > { %1067 = vst.msk [vmem:[%s1870_s19 + $0x70] sm:$0xff] %vm591_vm0, %v1051_v27  ;;  %1068 = vst.msk [vmem:[%s1870_s19 + $0x78] sm:$0xff] %vm591_vm0, %v1052_v45 }
 0x199 PF: > { %s15_s18 = sadd.s32 1, %s1410_s18  }
 0x19a   : > { %p12_p6 = scmp.ge.s32.totalorder %s15_s18, 5  }
 0x19c   :  { %14 = sbr.rel (!%p12_p6) target bundleno = 1 (0x1), region = 82 }

// kernel: split.1
= control target key start
LH: loop header
LB: loop body
LE: loop exit
PB: predicated region body
PF: predicated region fallthrough
CT: control target
= control target key end

     0   :  { %s36_s0 = inlined_call_operand.vmem [shape: f32[16,64], index: 0, kind: input, shape index: {}]   ;;  %s37_s1 = inlined_call_operand.vmem [shape: bf16[16,32], index: 1, kind: output, shape index: {}]  }
   0x1   :  { %v2_v0 = vld [vmem:[%s36_s0] sm:$0xff]  ;;  %v10_v1 = vld [vmem:[%s36_s0 + $0x8] sm:$0xff] }
   0x2   :  { %v15_v2 = vpack.c.bf16 %v10_v1, %v2_v0 }
   0x4   :  { %16 = vst [vmem:[%s37_s1] sm:$0xff] %v15_v2  }

// kernel: deformable_detr_forward.3
= control target key start
LH: loop header
LB: loop body
LE: loop exit
PB: predicated region body
PF: predicated region fallthrough
CT: control target
= control target key end

     0   :  { %s1662_s29 = smov 0   ;;  %s1664_s30 = smov 0   ;;  %s1809_s0 = inlined_call_operand.vmem [shape: bf16[32,32], index: 0, kind: input, shape index: {}]   ;;  %s1810_s1 = inlined_call_operand.vmem [shape: f32[32,32], index: 1, kind: input, shape index: {}]   ;;  %s1811_s2 = inlined_call_operand.vmem [shape: f32[32,32], index: 2, kind: input, shape index: {}]   ;;  %s1812_s3 = inlined_call_operand.vmem [shape: bf16[32,4], index: 3, kind: input, shape index: {}]   ;;  %s1813_s4 = inlined_call_operand.vmem [shape: f32[1,4], index: 4, kind: input, shape index: {}]   ;;  %s1814_s5 = inlined_call_operand.vmem [shape: bf16[3,32,32], index: 5, kind: input, shape index: {}]   ;;  %s1815_s6 = inlined_call_operand.vmem [shape: f32[3,1,32], index: 6, kind: input, shape index: {}]   ;;  %s1816_s7 = inlined_call_operand.vmem [shape: bf16[32,40], index: 7, kind: input, shape index: {}]   ;;  %s1817_s8 = inlined_call_operand.vmem [shape: f32[1,40], index: 8, kind: input, shape index: {}]   ;;  %s1818_s9 = inlined_call_operand.vmem [shape: bf16[32,32], index: 9, kind: input, shape index: {}]   ;;  %s1819_s10 = inlined_call_operand.vmem [shape: f32[1,32], index: 10, kind: input, shape index: {}]   ;;  %s1820_s11 = inlined_call_operand.vmem [shape: bf16[32,4], index: 11, kind: input, shape index: {}]   ;;  %s1821_s12 = inlined_call_operand.vmem [shape: f32[1,4], index: 12, kind: input, shape index: {}]   ;;  %s1822_s13 = inlined_call_operand.vmem [shape: f32[3,32,8], index: 13, kind: output, shape index: {0}]   ;;  %s1823_s14 = inlined_call_operand.vmem [shape: f32[3,32,4], index: 14, kind: output, shape index: {1}]  }
   0x1   :  { %s1666_s15 = smov 0  }
   0x2 LB: > { %1826 = sst [smem:[#allocation4_spill]] %s1580_s30  ;;  %s34_s16 = sadd.s32 1, %s1580_s30  ;;  %s1584_s15 = sphi %s1666_s15, %s25_s15   ;;  %s1580_s30 = sphi %s1664_s30, %s1832_s30   ;;  %s1576_s29 = sphi %s1662_s29, %s1831_s29  }
   0x3   : > { %1827 = sst [smem:[#allocation5_spill]] %s1584_s15  ;;  %p1369_p0 = scmp.ge.s32.totalorder %s1584_s15, 1 }
   0x4   : > { %p35_p1 = scmp.ge.s32.totalorder %s34_s16, 3  ;;  %p472_p2 = scmp.lt.s32.totalorder %s1584_s15, 4 }
   0x6   : > { %s1834_s16 = smov (%p35_p1, %s34_s16), 0  ;;  %p473_p3 = pnand %p1369_p0, %p472_p2 }
   0x7   : > { %1828 = sst [smem:[#allocation6_spill]] %s1834_s16  ;;  %p567_p4 = scmp.lt.s32.totalorder (!%p473_p3), %s1576_s29, 2 }
   0x8   : > { %476 = sbr.rel (%p473_p3) target bundleno = 1215 (0x4bf), region = 72  ;;  %p1376_p5 = scmp.ne.s32.totalorder (!%p473_p3), %s1576_s29, 0 }
   0xf   : > { %s1680_s17 = scalar_select %p567_p4, %s1576_s29, 2 }
  0x10   : > { %599 = sbr.rel (%p1376_p5) target bundleno = 294 (0x126), region = 76  ;;  %v1502_v0 = vld [vmem:[%s1812_s3] sm:$0xff] (!%p1376_p5)   ;;  %v1503_v1 = vld [vmem:[%s1812_s3 + $0x8] sm:$0xff] (!%p1376_p5)   ;;  %v602_v4 = vld [vmem:[%s1811_s2 + $0x10] sm:$0xff] (!%p1376_p5)  ;;  %vm604_vm0 = vcmask (!%p1376_p5), 261120   ;;  %vm765_vm1 = vcmask (!%p1376_p5), 31744  }
  0x11   : > { %s1414_s18 = sshll.u32 %s1680_s17, 4  ;;  %s1415_s25 = sshll.u32 %s1680_s17, 5  ;;  %1437 = vmatprep.subr.bf16.mxu0 (!%p1376_p5), %v1502_v0  ;;  %v600_v2 = vld [vmem:[%s1811_s2] sm:$0xff] (!%p1376_p5)  ;;  %v601_v3 = vld [vmem:[%s1811_s2 + $0x8] sm:$0xff] (!%p1376_p5)  ;;  %v603_v5 = vld [vmem:[%s1811_s2 + $0x18] sm:$0xff] (!%p1376_p5)  ;;  %607 = vst.msk [vmem:[#allocation2 + $0x10] sm:$0xff] (!%p1376_p5), %vm604_vm0, %v602_v4 }
  0x12   : > { %s1690_s24 = scalar_lea.vmem %s1814_s5, %s1414_s18  ;;  %s1696_s28 = scalar_lea.vmem %s1822_s13, %s1415_s25  ;;  %1438 = vmatpush3.bf16.msra.mxu0 (!%p1376_p5), %v1502_v0  ;;  %605 = vst.msk [vmem:[#allocation2] sm:$0xff] (!%p1376_p5), %vm604_vm0, %v600_v2  ;;  %606 = vst.msk [vmem:[#allocation2 + $0x8] sm:$0xff] (!%p1376_p5), %vm604_vm0, %v601_v3  ;;  %v1504_v6 = vld [vmem:[%s1809_s0] sm:$0xff] (!%p1376_p5)   ;;  %v1505_v7 = vld [vmem:[%s1809_s0 + $0x8] sm:$0xff] (!%p1376_p5)  }
  0x13   : > { %s1701_s15 = scalar_lea.vmem %s1823_s14, %s1415_s25  ;;  %1439 = vmatprep.subr.bf16.mxu0 (!%p1376_p5), %v1503_v1  ;;  %608 = vst.msk [vmem:[#allocation2 + $0x18] sm:$0xff] (!%p1376_p5), %vm604_vm0, %v603_v5  ;;  %1441 = vmatprep.mubr.msk.bf16.mxu0 (!%p1376_p5), %vm604_vm0, %v1504_v6  ;;  %v1377_v8 = vld [vmem:[%s1813_s4] ss:$0 sm:$0xff] (!%p1376_p5) }
  0x16   : > { %1440 = vmatpush3.bf16.msra.mxu0 (!%p1376_p5), %v1503_v1 }
  0x19   : > { %1442 = vmatmul.mubr.msk.bf16.vlgmr.msra.gmra.mrb[0].mxu0 %vm604_vm0, %v1505_v7 }
  0xec   : > { %v1443_v9 = vpop.f32.mrb[0].mxu0 }
  0xed   : > { %v695_v10 = vadd.f32 %v1443_v9, %v1377_v8  ;;  %v686_v11 = vpop.f32.mrb[1].mxu0 }
  0xee   : > { %v687_v12 = vadd.f32 %v1377_v8, %v686_v11  ;;  %v1444_v13 = vpop.f32.mrb[2].mxu0 }
  0xef   : > { %v1386_v14 = vmul.f32 -1.442695, %v695_v10  ;;  %v698_v15 = vadd.f32 %v1444_v13, %v1377_v8  ;;  %v689_v16 = vpop.f32.mrb[3].mxu0 }
  0xf0   : > { %v1384_v17 = vmul.f32 -1.442695, %v687_v12  ;;  %v690_v18 = vadd.f32 %v1377_v8, %v689_v16 }
  0xf1   : > { %1506 = vpow2.f32 %v1386_v14  ;;  %v1387_v19 = vmul.f32 -1.442695, %v698_v15 }
  0xf2   : > { %1508 = vpow2.f32 %v1384_v17  ;;  %v1385_v20 = vmul.f32 -1.442695, %v690_v18 }
  0xf3   : > { %1510 = vpow2.f32 %v1387_v19 }
  0xf4   : > { %1512 = vpow2.f32 %v1385_v20 }
  0xfb   : > { %v1507_v21 = vpop.eup %1506 }
  0xfc   : > { %v1509_v22 = vpop.eup %1508  ;;  %v715_v23 = vadd.f32 1.0, %v1507_v21 }
  0xfd   : > { %v1511_v24 = vpop.eup %1510  ;;  %v713_v25 = vadd.f32 1.0, %v1509_v22 }
  0xfe   : > { %v1513_v26 = vpop.eup %1512  ;;  %1514 = vrcp.f32 %v715_v23  ;;  %v716_v27 = vadd.f32 1.0, %v1511_v24 }
  0xff   : > { %1516 = vrcp.f32 %v713_v25  ;;  %v714_v28 = vadd.f32 1.0, %v1513_v26 }
 0x100   : > { %1518 = vrcp.f32 %v716_v27 }
 0x101   : > { %1520 = vrcp.f32 %v714_v28 }
 0x108   : > { %v1515_v29 = vpop.eup %1514 }
 0x109   : > { %v1517_v30 = vpop.eup %1516  ;;  %v727_v31 = vmax.f32 %v1515_v29, 0.0 }
 0x10a   : > { %v1519_v32 = vpop.eup %1518  ;;  %v725_v33 = vmax.f32 %v1517_v30, 0.0 }
 0x10b   : > { %v1521_v34 = vpop.eup %1520  ;;  %v731_v35 = vmin.f32 %v727_v31, 1.0  ;;  %v728_v36 = vmax.f32 %v1519_v32, 0.0 }
 0x10c   : > { %v729_v37 = vmin.f32 %v725_v33, 1.0  ;;  %v726_v38 = vmax.f32 %v1521_v34, 0.0 }
 0x10d   : > { %v735_v39 = vmax.f32 %v731_v35, 1e-05  ;;  %v739_v40 = vsub.f32 1.0, %v731_v35  ;;  %v732_v41 = vmin.f32 %v728_v36, 1.0 }
 0x10e   : > { %v733_v42 = vmax.f32 %v729_v37, 1e-05  ;;  %v737_v43 = vsub.f32 1.0, %v729_v37  ;;  %v730_v44 = vmin.f32 %v726_v38, 1.0 }
 0x10f   : > { %v743_v45 = vmax.f32 %v739_v40, 1e-05  ;;  %1522 = vlog2.f32 %v735_v39  ;;  %v736_v46 = vmax.f32 %v732_v41, 1e-05  ;;  %v740_v47 = vsub.f32 1.0, %v732_v41 }
 0x110   : > { %v741_v48 = vmax.f32 %v737_v43, 1e-05  ;;  %1524 = vlog2.f32 %v733_v42  ;;  %v738_v49 = vsub.f32 1.0, %v730_v44  ;;  %v734_v51 = vmax.f32 %v730_v44, 1e-05 }
 0x111   : > { %1526 = vlog2.f32 %v743_v45  ;;  %v744_v50 = vmax.f32 %v740_v47, 1e-05 }
 0x112   : > { %1528 = vlog2.f32 %v741_v48  ;;  %v742_v52 = vmax.f32 %v738_v49, 1e-05 }
 0x113   : > { %1530 = vlog2.f32 %v736_v46 }
 0x114   : > { %1532 = vlog2.f32 %v744_v50 }
 0x115   : > { %1534 = vlog2.f32 %v734_v51 }
 0x116   : > { %1536 = vlog2.f32 %v742_v52 }
 0x119   : > { %v1523_v53 = vpop.eup %1522 }
 0x11a   : > { %v1525_v54 = vpop.eup %1524  ;;  %v750_v57 = vmul.f32 0.6931472, %v1523_v53 }
 0x11b   : > { %v1527_v55 = vpop.eup %1526  ;;  %v746_v60 = vmul.f32 0.6931472, %v1525_v54 }
 0x11c   : > { %v1529_v56 = vpop.eup %1528  ;;  %v758_v58 = vmul.f32 0.6931472, %v1527_v55 }
 0x11d   : > { %v1531_v59 = vpop.eup %1530  ;;  %v754_v61 = vmul.f32 0.6931472, %v1529_v56 }
 0x11e   : > { %v1533_v62 = vpop.eup %1532  ;;  %v763_v63 = vsub.f32 %v750_v57, %v758_v58  ;;  %v752_v2 = vmul.f32 0.6931472, %v1531_v59 }
 0x11f   : > { %v1535_v0 = vpop.eup %1534  ;;  %v761_v1 = vsub.f32 %v746_v60, %v754_v61  ;;  %v760_v3 = vmul.f32 0.6931472, %v1533_v62 }
 0x120   : > { %v1537_v4 = vpop.eup %1536  ;;  %768 = vst.msk [vmem:[#allocation3 + $0x10] sm:$0xff] %vm765_vm1, %v763_v63  ;;  %v748_v6 = vmul.f32 0.6931472, %v1535_v0 }
 0x121   : > { %766 = vst.msk [vmem:[#allocation3] sm:$0xff] %vm765_vm1, %v761_v1  ;;  %v764_v5 = vsub.f32 %v752_v2, %v760_v3  ;;  %v756_v7 = vmul.f32 0.6931472, %v1537_v4 }
 0x123   : > { %769 = vst.msk [vmem:[#allocation3 + $0x18] sm:$0xff] %vm765_vm1, %v764_v5  ;;  %v762_v8 = vsub.f32 %v748_v6, %v756_v7 }
 0x125   : > { %767 = vst.msk [vmem:[#allocation3 + $0x8] sm:$0xff] %vm765_vm1, %v762_v8 }
 0x126 PF: > { %v1538_v9 = vld [vmem:[%s1690_s24] sm:$0xff]   ;;  %v1539_v10 = vld [vmem:[%s1690_s24 + $0x8] sm:$0xff]   ;;  %vm807_vm2 = vcmask 261120   ;;  %v776_v19 = vld [vmem:[%s1810_s1 + $0x10] sm:$0xff]  ;;  %s1829_s27 = scalar_lea.vmem %s1815_s6, %s1680_s17  ;;  %s1586_s19 = smov 96   ;;  %vm971_vm3 = vcmask 64512  }
 0x127   : > { %1445 = vmatprep.subr.bf16.mxu0 %v1538_v9  ;;  %v774_v13 = vld [vmem:[%s1810_s1] sm:$0xff]  ;;  %v775_v14 = vld [vmem:[%s1810_s1 + $0x8] sm:$0xff]  ;;  %v772_v16 = vld [vmem:[#allocation2 + $0x10] sm:$0xff]  ;;  %vm1172_vm4 = vcmask 31744  }
 0x128   : > { %v770_v11 = vld [vmem:[#allocation2] sm:$0xff]  ;;  %v771_v12 = vld [vmem:[#allocation2 + $0x8] sm:$0xff]  ;;  %1446 = vmatpush3.bf16.msra.mxu0 %v1538_v9  ;;  %v777_v20 = vld [vmem:[%s1810_s1 + $0x18] sm:$0xff]  ;;  %v780_v21 = vadd.f32 %v776_v19, %v772_v16 }
 0x129   : > { %v778_v15 = vadd.f32 %v774_v13, %v770_v11  ;;  %v773_v17 = vld [vmem:[#allocation2 + $0x18] sm:$0xff]  ;;  %1447 = vmatprep.subr.bf16.mxu0 %v1539_v10  ;;  %v779_v18 = vadd.f32 %v775_v14, %v771_v12  ;;  %v1540_v25 = vld [vmem:[%s1816_s7] sm:$0xff]   ;;  %v1541_v26 = vld [vmem:[%s1816_s7 + $0x8] sm:$0xff]  }
 0x12a   : > { %v781_v22 = vadd.f32 %v777_v20, %v773_v17  ;;  %1453 = vmatprep.subr.bf16.mxu1 %v1540_v25  ;;  %v1388_v27 = vld [vmem:[%s1829_s27] ss:$0 sm:$0xff]  ;;  %v1543_v43 = vld [vmem:[%s1818_s9 + $0x8] sm:$0xff]  }
 0x12b   : > { %v782_v23 = vpack.c.bf16 %v779_v18, %v778_v15  ;;  %1454 = vmatpush3.bf16.msra.mxu1 %v1540_v25  ;;  %v1542_v42 = vld [vmem:[%s1818_s9] sm:$0xff]   ;;  %v1545_v60 = vld [vmem:[%s1820_s11 + $0x8] sm:$0xff]   ;;  %v1142_v18 = vld [vmem:[#allocation3 + $0x10] sm:$0xff] }
 0x12c   : > { %1448 = vmatpush3.bf16.msra.mxu0 %v1539_v10  ;;  %v783_v24 = vpack.c.bf16 %v781_v22, %v780_v21  ;;  %1455 = vmatprep.subr.bf16.mxu1 %v1541_v26  ;;  %v1393_v44 = vld [vmem:[%s1817_s8] ss:$0 sm:$0xff] }
 0x12d   : > { %1449 = vmatprep.mubr.msk.bf16.mxu0 %vm807_vm2, %v782_v23  ;;  %1461 = vmatprep.subr.bf16.mxu0 %v1542_v42  ;;  %v1544_v59 = vld [vmem:[%s1820_s11] sm:$0xff]  }
 0x12e   : > { %v1398_v1 = vld [vmem:[%s1819_s10] ss:$0 sm:$0xff] }
 0x12f   : > { %1450 = vmatmul.mubr.msk.bf16.vlgmr.msra.gmra.mrb[0].mxu0 %vm807_vm2, %v783_v24  ;;  %1456 = vmatpush3.bf16.msra.mxu1 %v1541_v26  ;;  %v1403_v16 = vld [vmem:[%s1821_s12] ss:$0 sm:$0xff]  ;;  %v1143_v24 = vld [vmem:[#allocation3 + $0x18] sm:$0xff] }
 0x130   : > { %1462 = vmatpush3.bf16.msra.mxu0 %v1542_v42  ;;  %1469 = vmatprep.subr.bf16.mxu1 %v1544_v59  ;;  %v1140_v21 = vld [vmem:[#allocation3] sm:$0xff] }
 0x131   : > { %1463 = vmatprep.subr.bf16.mxu0 %v1543_v43 }
 0x134   : > { %1464 = vmatpush3.bf16.msra.mxu0 %v1543_v43 }
 0x202   : > { %v1451_v28 = vpop.f32.mrb[0].mxu0 }
 0x203   : > { %v857_v29 = vadd.f32 %v1451_v28, %v1388_v27  ;;  %v848_v30 = vpop.f32.mrb[1].mxu0  ;;  %v1141_v28 = vld [vmem:[#allocation3 + $0x8] sm:$0xff] }
 0x204   : > { %v849_v31 = vadd.f32 %v1388_v27, %v848_v30  ;;  %v1452_v32 = vpop.f32.mrb[2].mxu0 }
 0x205   : > { %v865_v33 = vmax.f32 %v857_v29, 0.0  ;;  %v860_v34 = vadd.f32 %v1452_v32, %v1388_v27  ;;  %v851_v35 = vpop.f32.mrb[3].mxu0 }
 0x206   : > { %v863_v36 = vmax.f32 %v849_v31, 0.0  ;;  %v852_v37 = vadd.f32 %v1388_v27, %v851_v35 }
 0x207   : > { %869 = vst.msk [vmem:[#allocation2 + $0x10] sm:$0xff] %vm807_vm2, %v865_v33  ;;  %v866_v38 = vmax.f32 %v860_v34, 0.0 }
 0x208   : > { %867 = vst.msk [vmem:[#allocation2] sm:$0xff] %vm807_vm2, %v863_v36  ;;  %v864_v39 = vmax.f32 %v852_v37, 0.0 }
 0x209   : > { %870 = vst.msk [vmem:[#allocation2 + $0x18] sm:$0xff] %vm807_vm2, %v866_v38  ;;  %v872_v40 = vpack.c.bf16 %v866_v38, %v865_v33 }
 0x20a   : > { %868 = vst.msk [vmem:[#allocation2 + $0x8] sm:$0xff] %vm807_vm2, %v864_v39  ;;  %v871_v41 = vpack.c.bf16 %v864_v39, %v863_v36 }
 0x20c   : > { %1457 = vmatprep.mubr.msk.bf16.mxu1 %vm807_vm2, %v871_v41 }
 0x20d   : > { %1458 = vmatmul.mubr.msk.bf16.vlgmr.msra.gmra.mrb[0].mxu1 %vm807_vm2, %v872_v40 }
 0x20e   : > { %1470 = vmatpush3.bf16.msra.mxu1 %v1544_v59 }
 0x20f   : > { %1471 = vmatprep.subr.bf16.mxu1 %v1545_v60 }
 0x212   : > { %1472 = vmatpush3.bf16.msra.mxu1 %v1545_v60 }
 0x2e0   : > { %v1459_v45 = vpop.f32.mrb[0].mxu1 }
 0x2e1   : > { %v945_v46 = vadd.f32 %v1459_v45, %v1393_v44  ;;  %v936_v47 = vpop.f32.mrb[1].mxu1 }
 0x2e2   : > { %v937_v48 = vadd.f32 %v1393_v44, %v936_v47  ;;  %v1460_v49 = vpop.f32.mrb[2].mxu1 }
 0x2e3   : > { %v948_v50 = vadd.f32 %v1460_v49, %v1393_v44  ;;  %963 = vrot.lane.b32.xlu1 %v945_v46, %s1586_s19  ;;  %v939_v51 = vpop.f32.mrb[3].mxu1  ;;  %v953_v53 = vmax.f32 %v945_v46, 0.0 }
 0x2e4   : > { %v940_v52 = vadd.f32 %v1393_v44, %v939_v51  ;;  %959 = vrot.lane.b32.xlu0 %v937_v48, %s1586_s19  ;;  %v951_v55 = vmax.f32 %v937_v48, 0.0 }
 0x2e5   : > { %v954_v54 = vmax.f32 %v948_v50, 0.0 }
 0x2e6   : > { %v952_v56 = vmax.f32 %v940_v52, 0.0 }
 0x2e7   : > { %v977_v57 = vpack.c.bf16 %v954_v54, %v953_v53  ;;  %965 = vrot.lane.b32.xlu1 %v948_v50, %s1586_s19 }
 0x2e8   : > { %v976_v58 = vpack.c.bf16 %v952_v56, %v951_v55  ;;  %961 = vrot.lane.b32.xlu0 %v940_v52, %s1586_s19 }
 0x2ea   : > { %1465 = vmatprep.mubr.msk.bf16.mxu0 %vm807_vm2, %v976_v58 }
 0x2eb   : > { %1466 = vmatmul.mubr.msk.bf16.vlgmr.msra.gmra.mrb[4].mxu0 %vm807_vm2, %v977_v57 }
 0x355   : > { %v964_v61 = vpop.permute.xlu1 %963 }
 0x356   : > { %974 = vst.msk [vmem:[%s1696_s28 + $0x10] sm:$0xff] %vm971_vm3, %v964_v61  ;;  %v960_v62 = vpop.permute.xlu0 %959 }
 0x357   : > { %972 = vst.msk [vmem:[%s1696_s28] sm:$0xff] %vm971_vm3, %v960_v62 }
 0x359   : > { %v966_v63 = vpop.permute.xlu1 %965 }
 0x35a   : > { %975 = vst.msk [vmem:[%s1696_s28 + $0x18] sm:$0xff] %vm971_vm3, %v966_v63  ;;  %v962_v0 = vpop.permute.xlu0 %961 }
 0x35b   : > { %973 = vst.msk [vmem:[%s1696_s28 + $0x8] sm:$0xff] %vm971_vm3, %v962_v0 }
 0x3be   : > { %v1467_v2 = vpop.f32.mrb[4].mxu0 }
 0x3bf   : > { %v1050_v3 = vadd.f32 %v1467_v2, %v1398_v1  ;;  %v1041_v4 = vpop.f32.mrb[5].mxu0 }
 0x3c0   : > { %v1042_v5 = vadd.f32 %v1398_v1, %v1041_v4  ;;  %v1468_v6 = vpop.f32.mrb[6].mxu0 }
 0x3c1   : > { %v1053_v7 = vadd.f32 %v1468_v6, %v1398_v1  ;;  %v1044_v8 = vpop.f32.mrb[7].mxu0  ;;  %v1058_v10 = vmax.f32 %v1050_v3, 0.0 }
 0x3c2   : > { %v1045_v9 = vadd.f32 %v1398_v1, %v1044_v8  ;;  %v1056_v12 = vmax.f32 %v1042_v5, 0.0 }
 0x3c3   : > { %v1059_v11 = vmax.f32 %v1053_v7, 0.0 }
 0x3c4   : > { %v1057_v13 = vmax.f32 %v1045_v9, 0.0 }
 0x3c5   : > { %v1061_v14 = vpack.c.bf16 %v1059_v11, %v1058_v10 }
 0x3c6   : > { %v1060_v15 = vpack.c.bf16 %v1057_v13, %v1056_v12 }
 0x3c8   : > { %1473 = vmatprep.mubr.msk.bf16.mxu1 %vm807_vm2, %v1060_v15 }
 0x3c9   : > { %1474 = vmatmul.mubr.msk.bf16.vlgmr.msra.gmra.mrb[4].mxu1 %vm807_vm2, %v1061_v14 }
 0x49c   : > { %v1475_v17 = vpop.f32.mrb[4].mxu1 }
 0x49d   : > { %v1134_v19 = vadd.f32 %v1475_v17, %v1403_v16  ;;  %v1125_v20 = vpop.f32.mrb[5].mxu1 }
 0x49e   : > { %v1126_v22 = vadd.f32 %v1403_v16, %v1125_v20  ;;  %v1476_v23 = vpop.f32.mrb[6].mxu1 }
 0x49f   : > { %v1146_v25 = vadd.f32 %v1142_v18, %v1134_v19  ;;  %v1137_v26 = vadd.f32 %v1476_v23, %v1403_v16  ;;  %v1128_v27 = vpop.f32.mrb[7].mxu1 }
 0x4a0   : > { %v1144_v29 = vadd.f32 %v1140_v21, %v1126_v22  ;;  %v1129_v30 = vadd.f32 %v1403_v16, %v1128_v27 }
 0x4a1   : > { %v1410_v31 = vmul.f32 -1.442695, %v1146_v25  ;;  %v1147_v32 = vadd.f32 %v1143_v24, %v1137_v26 }
 0x4a2   : > { %v1408_v33 = vmul.f32 -1.442695, %v1144_v29  ;;  %v1145_v34 = vadd.f32 %v1141_v28, %v1129_v30 }
 0x4a3   : > { %1546 = vpow2.f32 %v1410_v31  ;;  %v1411_v35 = vmul.f32 -1.442695, %v1147_v32 }
 0x4a4   : > { %1548 = vpow2.f32 %v1408_v33  ;;  %v1409_v36 = vmul.f32 -1.442695, %v1145_v34 }
 0x4a5   : > { %1550 = vpow2.f32 %v1411_v35 }
 0x4a6   : > { %1552 = vpow2.f32 %v1409_v36 }
 0x4ad   : > { %v1547_v37 = vpop.eup %1546 }
 0x4ae   : > { %v1549_v38 = vpop.eup %1548  ;;  %v1162_v39 = vadd.f32 1.0, %v1547_v37 }
 0x4af   : > { %v1551_v40 = vpop.eup %1550  ;;  %v1160_v41 = vadd.f32 1.0, %v1549_v38 }
 0x4b0   : > { %v1553_v42 = vpop.eup %1552  ;;  %1554 = vrcp.f32 %v1162_v39  ;;  %v1163_v43 = vadd.f32 1.0, %v1551_v40 }
 0x4b1   : > { %1556 = vrcp.f32 %v1160_v41  ;;  %v1161_v44 = vadd.f32 1.0, %v1553_v42 }
 0x4b2   : > { %1558 = vrcp.f32 %v1163_v43 }
 0x4b3   : > { %1560 = vrcp.f32 %v1161_v44 }
 0x4ba   : > { %v1555_v45 = vpop.eup %1554 }
 0x4bb   : > { %v1557_v46 = vpop.eup %1556  ;;  %1175 = vst.msk [vmem:[%s1701_s15 + $0x10] sm:$0xff] %vm1172_vm4, %v1555_v45 }
 0x4bc   : > { %v1559_v47 = vpop.eup %1558  ;;  %1173 = vst.msk [vmem:[%s1701_s15] sm:$0xff] %vm1172_vm4, %v1557_v46 }
 0x4bd   : > { %v1561_v48 = vpop.eup %1560  ;;  %1176 = vst.msk [vmem:[%s1701_s15 + $0x18] sm:$0xff] %vm1172_vm4, %v1559_v47 }
 0x4be   : > { %1174 = vst.msk [vmem:[%s1701_s15 + $0x8] sm:$0xff] %vm1172_vm4, %v1561_v48 }
 0x4bf PF: > { %s1830_s17 = sld [smem:[#allocation5_spill]]  ;;  %s1831_s29 = sld [smem:[#allocation4_spill]] }
 0x4c0   : > { %s1832_s30 = sld [smem:[#allocation6_spill]] }
 0x4c5   : > { %s25_s15 = sadd.s32 1, %s1830_s17  }
 0x4c6   : > { %p22_p6 = scmp.ge.s32.totalorder %s25_s15, 5  }
 0x4c8   :  { %24 = sbr.rel (!%p22_p6) target bundleno = 2 (0x2), region = 130 }

</bundles_post_ra>
